<compile_context>
chip_gen: v7x
topology: tpu7x:2x2x1
jax: 0.10.0
libtpu: 0.0.40
codegen_flags: <defaults>
</compile_context>

<pallas_src>
import functools
import math

import jax
import jax.numpy as jnp
from jax.experimental import pallas as pl
from jax.experimental.pallas import tpu as pltpu


def _layernorm(x, gamma, beta, eps=1e-5):
    mu = jnp.mean(x, axis=-1, keepdims=True)
    var = jnp.mean((x - mu) ** 2, axis=-1, keepdims=True)
    return (x - mu) * jax.lax.rsqrt(var + eps) * gamma + beta


def decoder_layer_kernel(x_ref, bias_ref,
                         wq_ref, bq_ref, wkv_ref, bkv_ref, wo_ref, bo_ref,
                         gamma_ref, beta_ref,
                         w1_ref, b1_ref, w2_ref, b2_ref,
                         o_ref,
                         kv_scr, ctx_scr,
                         *, n_head, q_tile):
    f32 = jnp.float32
    E = wq_ref.shape[0]
    hd = E // n_head
    cdt = wq_ref.dtype                      # MXU operand dtype (f32 or bf16)
    T = kv_scr.shape[0]

    i = pl.program_id(1)
    x_view = x_ref.at[0]                    # (T, E) ref view, no load

    # ---- K/V projection ONCE per batch row.  The q grid axis is "arbitrary"
    #      (sequential), so i == 0 always runs first; kv_scr persists across
    #      the q tiles of this batch. -------------------------------------------
    @pl.when(i == 0)
    def _():
        x_all = x_view[...].astype(cdt)                               # (T, E)
        kv = jnp.dot(x_all, wkv_ref[...],
                     preferred_element_type=f32) + bkv_ref[...]       # (T, 2E) f32
        kv_scr[...] = kv.astype(cdt)

    # ---- Q rows of this tile, sliced from the single x block. -----------------
    start = pl.multiple_of(i * q_tile, q_tile)
    x_q = x_view[pl.ds(start, q_tile), :]                             # (tq, E)
    x_q_f32 = x_q.astype(f32)

    # Full-width Q projection (1/sqrt(hd) scale and bq already folded into wq/bq).
    q_all = (jnp.dot(x_q.astype(cdt), wq_ref[...],
                     preferred_element_type=f32) + bq_ref[...]).astype(cdt)

    bias = bias_ref[...].astype(f32)                                  # (tq, T)

    # ---- per-head attention; ctx written into a (tq, E) scratch slab. ---------
    for h in range(n_head):                 # static loop, n_head is small
        qh = q_all[:, h * hd:(h + 1) * hd]                            # (tq, hd)
        kh = kv_scr[:, h * hd:(h + 1) * hd]                           # (T,  hd)
        vh = kv_scr[:, E + h * hd:E + (h + 1) * hd]                   # (T,  hd)

        # q @ k^T without materializing a transpose
        s = jax.lax.dot_general(qh, kh, (((1,), (1,)), ((), ())),
                                preferred_element_type=f32)           # (tq, T)
        s = s + bias
        m = jnp.max(s, axis=-1, keepdims=True)
        p = jnp.exp(s - m)
        l = jnp.sum(p, axis=-1, keepdims=True)
        pv = jnp.dot(p.astype(cdt), vh, preferred_element_type=f32)   # (tq, hd)
        ctx_scr[:, h * hd:(h + 1) * hd] = (pv / l).astype(cdt)        # exact divide

    # Single full-width output projection over the concatenated heads.
    attn = jnp.dot(ctx_scr[...], wo_ref[...],
                   preferred_element_type=f32) + bo_ref[...]          # (tq, E) f32

    gamma = gamma_ref[...]
    beta = beta_ref[...]

    # residual + LayerNorm (dropout = identity in eval), stats in f32.
    y = _layernorm(attn + x_q_f32, gamma, beta)

    # ---- FFN: Linear -> ReLU -> Linear. ---------------------------------------
    h1 = jnp.dot(y.astype(cdt), w1_ref[...],
                 preferred_element_type=f32) + b1_ref[...]
    h1 = jnp.maximum(h1, 0.0)
    y2 = jnp.dot(h1.astype(cdt), w2_ref[...],
                 preferred_element_type=f32) + b2_ref[...]

    out = _layernorm(y2 + y, gamma, beta)
    o_ref[0] = out.astype(o_ref.dtype)


def _vmem_limit_bytes():
    # Generation-aware VMEM cap: ~100 MiB on 128-MiB parts (v5e/v6e),
    # ~56 MiB on 64-MiB parts (v7x).  Conservative fallback if query fails.
    try:
        cap = int(pltpu.get_tpu_info().vmem_capacity_bytes)
    except Exception:
        return 48 * 1024 * 1024
    return max(32 * 1024 * 1024, min(100 * 1024 * 1024, cap - 8 * 1024 * 1024))


def decoder_layer(x, time_mask, params, *, n_head, q_tile=None, compute_dtype=None):
    B, T, E = x.shape
    H = params["w1"].shape[1]
    assert E % n_head == 0
    hd = E // n_head
    f32 = jnp.float32
    cdt = jnp.dtype(compute_dtype) if compute_dtype is not None else jnp.dtype(x.dtype)

    if q_tile is None:
        q_tile = T if T <= 128 else 128
    min_rows = 16 if cdt == jnp.bfloat16 else 8     # dtype-aware second-minor tiling
    assert T % q_tile == 0
    assert q_tile == T or q_tile % min_rows == 0, (q_tile, min_rows)
    num_q = T // q_tile

    # --- one-time parameter transforms (layout plumbing, not per-call compute) ---
    scale = 1.0 / math.sqrt(hd)
    wq_s = (params["wq"].astype(f32) * scale).astype(cdt)            # scale folded in
    bq_s = params["bq"].astype(f32) * scale
    wkv = jnp.concatenate([params["wk"], params["wv"]], axis=1).astype(cdt)  # (E, 2E)
    bkv = jnp.concatenate([params["bk"], params["bv"]], axis=1).astype(f32)  # (1, 2E)
    wo = params["wo"].astype(cdt)
    bo = params["bo"].astype(f32)
    w1 = params["w1"].astype(cdt)
    b1 = params["b1"].astype(f32)
    w2 = params["w2"].astype(cdt)
    b2 = params["b2"].astype(f32)
    gamma = params["gamma"].astype(f32)
    beta = params["beta"].astype(f32)

    # Additive attention bias: 0 where attend, -1e9 where masked.
    mask_bias = (time_mask.astype(f32) - 1.0) * 1e9

    const2 = lambda shape: pl.BlockSpec(shape, lambda b, i: (0, 0))

    kernel = functools.partial(decoder_layer_kernel, n_head=n_head, q_tile=q_tile)
    return pl.pallas_call(
        kernel,
        out_shape=jax.ShapeDtypeStruct((B, T, E), x.dtype),
        grid_spec=pltpu.PrefetchScalarGridSpec(
            num_scalar_prefetch=0,
            grid=(B, num_q),
            in_specs=[
                pl.BlockSpec((1, T, E), lambda b, i: (b, 0, 0)),   # x (Q + K/V rows)
                pl.BlockSpec((q_tile, T), lambda b, i: (i, 0)),    # additive mask bias
                const2((E, E)), const2((1, E)),                    # Wq*scale, bq*scale
                const2((E, 2 * E)), const2((1, 2 * E)),            # [Wk|Wv], [bk|bv]
                const2((E, E)), const2((1, E)),                    # Wo, bo
                const2((1, E)), const2((1, E)),                    # gamma, beta
                const2((E, H)), const2((1, H)),                    # W1, b1
                const2((H, E)), const2((1, E)),                    # W2, b2
            ],
            out_specs=pl.BlockSpec((1, q_tile, E), lambda b, i: (b, i, 0)),
            scratch_shapes=[
                pltpu.VMEM((T, 2 * E), cdt),      # K|V projected once per batch row
                pltpu.VMEM((q_tile, E), cdt),     # per-head ctx slab
            ],
        ),
        compiler_params=pltpu.CompilerParams(
            # q axis must stay sequential ("arbitrary") so the i == 0 K/V
            # projection runs before the other q tiles of the same batch row.
            dimension_semantics=("parallel", "arbitrary"),
            vmem_limit_bytes=_vmem_limit_bytes(),
        ),
    )(x, mask_bias,
      wq_s, bq_s, wkv, bkv, wo, bo,
      gamma, beta, w1, b1, w2, b2)


def decoder_layer_ref(x, time_mask, params, *, n_head):
    """Pure-JAX reference for correctness checking."""
    B, T, E = x.shape
    hd = E // n_head

    def ln(z):
        mu = jnp.mean(z, -1, keepdims=True)
        var = jnp.mean((z - mu) ** 2, -1, keepdims=True)
        return (z - mu) / jnp.sqrt(var + 1e-5) * params["gamma"][0] + params["beta"][0]

    q = x @ params["wq"] + params["bq"]
    k = x @ params["wk"] + params["bk"]
    v = x @ params["wv"] + params["bv"]
    q = q.reshape(B, T, n_head, hd).transpose(0, 2, 1, 3)
    k = k.reshape(B, T, n_head, hd).transpose(0, 2, 1, 3)
    v = v.reshape(B, T, n_head, hd).transpose(0, 2, 1, 3)
    s = jnp.einsum("bhqd,bhkd->bhqk", q, k) / math.sqrt(hd)
    s = jnp.where(time_mask[None, None] == 0, -1e9, s)
    p = jax.nn.softmax(s, axis=-1)
    a = jnp.einsum("bhqk,bhkd->bhqd", p, v).transpose(0, 2, 1, 3).reshape(B, T, E)
    a = a @ params["wo"] + params["bo"]
    y = ln(a + x)
    h1 = jnp.maximum(y @ params["w1"] + params["b1"], 0.0)
    y2 = h1 @ params["w2"] + params["b2"]
    return ln(y2 + y)


def init_params(key, n_embd, n_hddn):
    keys = jax.random.split(key, 8)
    s = 0.02
    return {
        "wq": jax.random.normal(keys[0], (n_embd, n_embd), jnp.float32) * s,
        "wk": jax.random.normal(keys[1], (n_embd, n_embd), jnp.float32) * s,
        "wv": jax.random.normal(keys[2], (n_embd, n_embd), jnp.float32) * s,
        "wo": jax.random.normal(keys[3], (n_embd, n_embd), jnp.float32) * s,
        "bq": jnp.zeros((1, n_embd), jnp.float32),
        "bk": jnp.zeros((1, n_embd), jnp.float32),
        "bv": jnp.zeros((1, n_embd), jnp.float32),
        "bo": jnp.zeros((1, n_embd), jnp.float32),
        "gamma": jnp.ones((1, n_embd), jnp.float32),
        "beta": jnp.zeros((1, n_embd), jnp.float32),
        "w1": jax.random.normal(keys[4], (n_embd, n_hddn), jnp.float32) * s,
        "b1": jnp.zeros((1, n_hddn), jnp.float32),
        "w2": jax.random.normal(keys[5], (n_hddn, n_embd), jnp.float32) * s,
        "b2": jnp.zeros((1, n_embd), jnp.float32),
    }


if __name__ == "__main__":
    B, T, n_embd, n_head, n_hddn = 2, 16, 32, 4, 64

    key = jax.random.PRNGKey(0)
    k_x, k_p = jax.random.split(key)
    x_dec = jax.random.normal(k_x, (B, T, n_embd), jnp.float32)
    # causal time mask (1 = attend, 0 = masked)
    time_mask = jnp.tril(jnp.ones((T, T), jnp.float32))
    params = init_params(k_p, n_embd, n_hddn)

    ref = decoder_layer_ref(x_dec, time_mask, params, n_head=n_head)

    # f32 compute, two q tiles per batch row (exercises the once-per-batch K/V path).
    out = decoder_layer(x_dec, time_mask, params, n_head=n_head, q_tile=8)
    out = jax.block_until_ready(out)
    assert out.shape == (B, T, n_embd)
    err = float(jnp.max(jnp.abs(out - ref)))
    assert jnp.allclose(out, ref, atol=2e-4, rtol=2e-4), err

    # bf16 weights / MXU operands (f32 accumulation, f32 softmax/LayerNorm stats).
    out_bf16 = decoder_layer(x_dec, time_mask, params, n_head=n_head,
                             compute_dtype=jnp.bfloat16)
    out_bf16 = jax.block_until_ready(out_bf16)
    err_bf16 = float(jnp.max(jnp.abs(out_bf16 - ref)))
    assert jnp.allclose(out_bf16, ref, atol=1e-1, rtol=1e-1), err_bf16

    print("KERNEL_OK")
</pallas_src>

<mosaic_0001>
module attributes {stable_mosaic.version = 11 : i64} {
  func.func @decoder_layer_kernel(%arg0: i32, %arg1: i32, %arg2: memref<1x16x32xf32, #tpu.memory_space<vmem>>, %arg3: memref<8x16xf32, #tpu.memory_space<vmem>>, %arg4: memref<32x32xf32, #tpu.memory_space<vmem>>, %arg5: memref<1x32xf32, #tpu.memory_space<vmem>>, %arg6: memref<32x64xf32, #tpu.memory_space<vmem>>, %arg7: memref<1x64xf32, #tpu.memory_space<vmem>>, %arg8: memref<32x32xf32, #tpu.memory_space<vmem>>, %arg9: memref<1x32xf32, #tpu.memory_space<vmem>>, %arg10: memref<1x32xf32, #tpu.memory_space<vmem>>, %arg11: memref<1x32xf32, #tpu.memory_space<vmem>>, %arg12: memref<32x64xf32, #tpu.memory_space<vmem>>, %arg13: memref<1x64xf32, #tpu.memory_space<vmem>>, %arg14: memref<64x32xf32, #tpu.memory_space<vmem>>, %arg15: memref<1x32xf32, #tpu.memory_space<vmem>>, %arg16: memref<1x8x32xf32, #tpu.memory_space<vmem>>, %arg17: memref<16x64xf32, #tpu.memory_space<vmem>>, %arg18: memref<8x32xf32, #tpu.memory_space<vmem>>) attributes {dimension_semantics = [#tpu.dimension_semantics<parallel>, #tpu.dimension_semantics<arbitrary>], iteration_bounds = array<i64: 2, 2>, scalar_prefetch = 0 : i64, scratch_operands = 2 : i64, tpu.core_type = #tpu.core_type<tc>, window_params = [{transform_indices = @transform_0, window_bounds = array<i64: 1, 16, 32>}, {transform_indices = @transform_1, window_bounds = array<i64: 8, 16>}, {pipeline_mode = #tpu.pipeline_mode<synchronous>, transform_indices = @transform_2, window_bounds = array<i64: 32, 32>}, {pipeline_mode = #tpu.pipeline_mode<synchronous>, transform_indices = @transform_3, window_bounds = array<i64: 1, 32>}, {pipeline_mode = #tpu.pipeline_mode<synchronous>, transform_indices = @transform_4, window_bounds = array<i64: 32, 64>}, {pipeline_mode = #tpu.pipeline_mode<synchronous>, transform_indices = @transform_5, window_bounds = array<i64: 1, 64>}, {pipeline_mode = #tpu.pipeline_mode<synchronous>, transform_indices = @transform_6, window_bounds = array<i64: 32, 32>}, {pipeline_mode = #tpu.pipeline_mode<synchronous>, transform_indices = @transform_7, window_bounds = array<i64: 1, 32>}, {pipeline_mode = #tpu.pipeline_mode<synchronous>, transform_indices = @transform_8, window_bounds = array<i64: 1, 32>}, {pipeline_mode = #tpu.pipeline_mode<synchronous>, transform_indices = @transform_9, window_bounds = array<i64: 1, 32>}, {pipeline_mode = #tpu.pipeline_mode<synchronous>, transform_indices = @transform_10, window_bounds = array<i64: 32, 64>}, {pipeline_mode = #tpu.pipeline_mode<synchronous>, transform_indices = @transform_11, window_bounds = array<i64: 1, 64>}, {pipeline_mode = #tpu.pipeline_mode<synchronous>, transform_indices = @transform_12, window_bounds = array<i64: 64, 32>}, {pipeline_mode = #tpu.pipeline_mode<synchronous>, transform_indices = @transform_13, window_bounds = array<i64: 1, 32>}, {transform_indices = @transform_14, window_bounds = array<i64: 1, 8, 32>}]} {
    %c0_i32 = arith.constant 0 : i32
    %0 = arith.cmpi eq, %arg1, %c0_i32 : i32
    %1 = arith.extui %0 : i1 to i32
    %c0_i32_0 = arith.constant 0 : i32
    %c0_i32_1 = arith.constant 0 : i32
    %2 = arith.cmpi ne, %1, %c0_i32_1 : i32
    scf.if %2 {
      %148 = arith.index_cast %c0_i32_0 : i32 to index
      %c0_79 = arith.constant 0 : index
      %c0_80 = arith.constant 0 : index
      %149 = vector.load %arg2[%148, %c0_79, %c0_80] : memref<1x16x32xf32, #tpu.memory_space<vmem>>, vector<1x16x32xf32>
      %150 = vector.shape_cast %149 : vector<1x16x32xf32> to vector<16x32xf32>
      %c0_81 = arith.constant 0 : index
      %c0_82 = arith.constant 0 : index
      %151 = vector.load %arg6[%c0_81, %c0_82] : memref<32x64xf32, #tpu.memory_space<vmem>>, vector<32x64xf32>
      %cst_83 = arith.constant dense<0.000000e+00> : vector<16x64xf32>
      %152 = tpu.matmul %150, %151, %cst_83 {dimension_numbers = #tpu.dot_dimension_numbers<[1], [0], [0], [1], [0, 0, 1, 1], [], []>} : vector<16x32xf32>, vector<32x64xf32>, vector<16x64xf32> -> vector<16x64xf32>
      %c0_84 = arith.constant 0 : index
      %c0_85 = arith.constant 0 : index
      %153 = vector.load %arg7[%c0_84, %c0_85] : memref<1x64xf32, #tpu.memory_space<vmem>>, vector<1x64xf32>
      %154 = vector.broadcast %153 : vector<1x64xf32> to vector<16x64xf32>
      %155 = arith.addf %152, %154 : vector<16x64xf32>
      %c0_86 = arith.constant 0 : index
      %c0_87 = arith.constant 0 : index
      %156 = vector.load %arg17[%c0_86, %c0_87] : memref<16x64xf32, #tpu.memory_space<vmem>>, vector<16x64xf32>
      tpu.vector_store %arg17[%c0_86, %c0_87], %155 {strides = array<i32>} : memref<16x64xf32, #tpu.memory_space<vmem>>, vector<16x64xf32>,
    } else {
    }
    %c8_i32 = arith.constant 8 : i32
    %3 = arith.muli %arg1, %c8_i32 : i32
    %4 = tpu.assume_multiple %3, 8 : i32
    %c0_i32_2 = arith.constant 0 : i32
    %c0_i32_3 = arith.constant 0 : i32
    %c0_i32_4 = arith.constant 0 : i32
    %5 = tpu.memref_slice %arg2[%c0_i32_2, %c0_i32_3, %c0_i32_4] : memref<1x16x32xf32, #tpu.memory_space<vmem>> -> memref<1x16x32xf32, #tpu.memory_space<vmem>>
    %6 = tpu.memref_squeeze %5 : memref<1x16x32xf32, #tpu.memory_space<vmem>> -> memref<16x32xf32, #tpu.memory_space<vmem>>
    %7 = arith.index_cast %4 : i32 to index
    %c0 = arith.constant 0 : index
    %8 = vector.load %6[%7, %c0] : memref<16x32xf32, #tpu.memory_space<vmem>>, vector<8x32xf32>
    %c0_5 = arith.constant 0 : index
    %c0_6 = arith.constant 0 : index
    %9 = vector.load %arg4[%c0_5, %c0_6] : memref<32x32xf32, #tpu.memory_space<vmem>>, vector<32x32xf32>
    %cst = arith.constant dense<0.000000e+00> : vector<8x32xf32>
    %10 = tpu.matmul %8, %9, %cst {dimension_numbers = #tpu.dot_dimension_numbers<[1], [0], [0], [1], [0, 0, 1, 1], [], []>} : vector<8x32xf32>, vector<32x32xf32>, vector<8x32xf32> -> vector<8x32xf32>
    %c0_7 = arith.constant 0 : index
    %c0_8 = arith.constant 0 : index
    %11 = vector.load %arg5[%c0_7, %c0_8] : memref<1x32xf32, #tpu.memory_space<vmem>>, vector<1x32xf32>
    %12 = vector.broadcast %11 : vector<1x32xf32> to vector<8x32xf32>
    %13 = arith.addf %10, %12 : vector<8x32xf32>
    %c0_9 = arith.constant 0 : index
    %c0_10 = arith.constant 0 : index
    %14 = vector.load %arg3[%c0_9, %c0_10] : memref<8x16xf32, #tpu.memory_space<vmem>>, vector<8x16xf32>
    %15 = vector.extract_strided_slice %13 {offsets = [0, 0], sizes = [8, 8], strides = [1, 1]} : vector<8x32xf32> to vector<8x8xf32>
    %c0_11 = arith.constant 0 : index
    %c0_12 = arith.constant 0 : index
    %16 = vector.load %arg17[%c0_11, %c0_12] : memref<16x64xf32, #tpu.memory_space<vmem>>, vector<16x8xf32>
    %c0_13 = arith.constant 0 : index
    %c32 = arith.constant 32 : index
    %17 = vector.load %arg17[%c0_13, %c32] : memref<16x64xf32, #tpu.memory_space<vmem>>, vector<16x8xf32>
    %cst_14 = arith.constant dense<0.000000e+00> : vector<8x16xf32>
    %18 = tpu.matmul %15, %16, %cst_14 {dimension_numbers = #tpu.dot_dimension_numbers<[1], [1], [0], [0], [0, 0, 1, 0], [], []>} : vector<8x8xf32>, vector<16x8xf32>, vector<8x16xf32> -> vector<8x16xf32>
    %19 = arith.addf %18, %14 : vector<8x16xf32>
    %cst_15 = arith.constant dense<0xFF800000> : vector<8xf32>
    %20 = vector.multi_reduction <maximumf>, %19, %cst_15 [1] : vector<8x16xf32> to vector<8xf32>
    %21 = vector.shape_cast %20 : vector<8xf32> to vector<8x1xf32>
    %22 = vector.broadcast %21 : vector<8x1xf32> to vector<8x16xf32>
    %23 = arith.subf %19, %22 : vector<8x16xf32>
    %24 = math.exp %23 : vector<8x16xf32>
    %cst_16 = arith.constant dense<0.000000e+00> : vector<8xf32>
    %25 = vector.multi_reduction <add>, %24, %cst_16 [1] : vector<8x16xf32> to vector<8xf32>
    %26 = vector.shape_cast %25 : vector<8xf32> to vector<8x1xf32>
    %cst_17 = arith.constant dense<0.000000e+00> : vector<8x8xf32>
    %27 = tpu.matmul %24, %17, %cst_17 {dimension_numbers = #tpu.dot_dimension_numbers<[1], [0], [0], [1], [0, 0, 1, 1], [], []>} : vector<8x16xf32>, vector<16x8xf32>, vector<8x8xf32> -> vector<8x8xf32>
    %28 = vector.broadcast %26 : vector<8x1xf32> to vector<8x8xf32>
    %29 = arith.divf %27, %28 : vector<8x8xf32>
    %c0_18 = arith.constant 0 : index
    %c0_19 = arith.constant 0 : index
    %30 = vector.load %arg18[%c0_18, %c0_19] : memref<8x32xf32, #tpu.memory_space<vmem>>, vector<8x8xf32>
    tpu.vector_store %arg18[%c0_18, %c0_19], %29 {strides = array<i32>} : memref<8x32xf32, #tpu.memory_space<vmem>>, vector<8x8xf32>,
    %31 = vector.extract_strided_slice %13 {offsets = [0, 8], sizes = [8, 8], strides = [1, 1]} : vector<8x32xf32> to vector<8x8xf32>
    %c0_20 = arith.constant 0 : index
    %c8 = arith.constant 8 : index
    %32 = vector.load %arg17[%c0_20, %c8] : memref<16x64xf32, #tpu.memory_space<vmem>>, vector<16x8xf32>
    %c0_21 = arith.constant 0 : index
    %c40 = arith.constant 40 : index
    %33 = vector.load %arg17[%c0_21, %c40] : memref<16x64xf32, #tpu.memory_space<vmem>>, vector<16x8xf32>
    %cst_22 = arith.constant dense<0.000000e+00> : vector<8x16xf32>
    %34 = tpu.matmul %31, %32, %cst_22 {dimension_numbers = #tpu.dot_dimension_numbers<[1], [1], [0], [0], [0, 0, 1, 0], [], []>} : vector<8x8xf32>, vector<16x8xf32>, vector<8x16xf32> -> vector<8x16xf32>
    %35 = arith.addf %34, %14 : vector<8x16xf32>
    %cst_23 = arith.constant dense<0xFF800000> : vector<8xf32>
    %36 = vector.multi_reduction <maximumf>, %35, %cst_23 [1] : vector<8x16xf32> to vector<8xf32>
    %37 = vector.shape_cast %36 : vector<8xf32> to vector<8x1xf32>
    %38 = vector.broadcast %37 : vector<8x1xf32> to vector<8x16xf32>
    %39 = arith.subf %35, %38 : vector<8x16xf32>
    %40 = math.exp %39 : vector<8x16xf32>
    %cst_24 = arith.constant dense<0.000000e+00> : vector<8xf32>
    %41 = vector.multi_reduction <add>, %40, %cst_24 [1] : vector<8x16xf32> to vector<8xf32>
    %42 = vector.shape_cast %41 : vector<8xf32> to vector<8x1xf32>
    %cst_25 = arith.constant dense<0.000000e+00> : vector<8x8xf32>
    %43 = tpu.matmul %40, %33, %cst_25 {dimension_numbers = #tpu.dot_dimension_numbers<[1], [0], [0], [1], [0, 0, 1, 1], [], []>} : vector<8x16xf32>, vector<16x8xf32>, vector<8x8xf32> -> vector<8x8xf32>
    %44 = vector.broadcast %42 : vector<8x1xf32> to vector<8x8xf32>
    %45 = arith.divf %43, %44 : vector<8x8xf32>
    %c0_26 = arith.constant 0 : index
    %c8_27 = arith.constant 8 : index
    %46 = vector.load %arg18[%c0_26, %c8_27] : memref<8x32xf32, #tpu.memory_space<vmem>>, vector<8x8xf32>
    tpu.vector_store %arg18[%c0_26, %c8_27], %45 {strides = array<i32>} : memref<8x32xf32, #tpu.memory_space<vmem>>, vector<8x8xf32>,
    %47 = vector.extract_strided_slice %13 {offsets = [0, 16], sizes = [8, 8], strides = [1, 1]} : vector<8x32xf32> to vector<8x8xf32>
    %c0_28 = arith.constant 0 : index
    %c16 = arith.constant 16 : index
    %48 = vector.load %arg17[%c0_28, %c16] : memref<16x64xf32, #tpu.memory_space<vmem>>, vector<16x8xf32>
    %c0_29 = arith.constant 0 : index
    %c48 = arith.constant 48 : index
    %49 = vector.load %arg17[%c0_29, %c48] : memref<16x64xf32, #tpu.memory_space<vmem>>, vector<16x8xf32>
    %cst_30 = arith.constant dense<0.000000e+00> : vector<8x16xf32>
    %50 = tpu.matmul %47, %48, %cst_30 {dimension_numbers = #tpu.dot_dimension_numbers<[1], [1], [0], [0], [0, 0, 1, 0], [], []>} : vector<8x8xf32>, vector<16x8xf32>, vector<8x16xf32> -> vector<8x16xf32>
    %51 = arith.addf %50, %14 : vector<8x16xf32>
    %cst_31 = arith.constant dense<0xFF800000> : vector<8xf32>
    %52 = vector.multi_reduction <maximumf>, %51, %cst_31 [1] : vector<8x16xf32> to vector<8xf32>
    %53 = vector.shape_cast %52 : vector<8xf32> to vector<8x1xf32>
    %54 = vector.broadcast %53 : vector<8x1xf32> to vector<8x16xf32>
    %55 = arith.subf %51, %54 : vector<8x16xf32>
    %56 = math.exp %55 : vector<8x16xf32>
    %cst_32 = arith.constant dense<0.000000e+00> : vector<8xf32>
    %57 = vector.multi_reduction <add>, %56, %cst_32 [1] : vector<8x16xf32> to vector<8xf32>
    %58 = vector.shape_cast %57 : vector<8xf32> to vector<8x1xf32>
    %cst_33 = arith.constant dense<0.000000e+00> : vector<8x8xf32>
    %59 = tpu.matmul %56, %49, %cst_33 {dimension_numbers = #tpu.dot_dimension_numbers<[1], [0], [0], [1], [0, 0, 1, 1], [], []>} : vector<8x16xf32>, vector<16x8xf32>, vector<8x8xf32> -> vector<8x8xf32>
    %60 = vector.broadcast %58 : vector<8x1xf32> to vector<8x8xf32>
    %61 = arith.divf %59, %60 : vector<8x8xf32>
    %c0_34 = arith.constant 0 : index
    %c16_35 = arith.constant 16 : index
    %62 = vector.load %arg18[%c0_34, %c16_35] : memref<8x32xf32, #tpu.memory_space<vmem>>, vector<8x8xf32>
    tpu.vector_store %arg18[%c0_34, %c16_35], %61 {strides = array<i32>} : memref<8x32xf32, #tpu.memory_space<vmem>>, vector<8x8xf32>,
    %63 = vector.extract_strided_slice %13 {offsets = [0, 24], sizes = [8, 8], strides = [1, 1]} : vector<8x32xf32> to vector<8x8xf32>
    %c0_36 = arith.constant 0 : index
    %c24 = arith.constant 24 : index
    %64 = vector.load %arg17[%c0_36, %c24] : memref<16x64xf32, #tpu.memory_space<vmem>>, vector<16x8xf32>
    %c0_37 = arith.constant 0 : index
    %c56 = arith.constant 56 : index
    %65 = vector.load %arg17[%c0_37, %c56] : memref<16x64xf32, #tpu.memory_space<vmem>>, vector<16x8xf32>
    %cst_38 = arith.constant dense<0.000000e+00> : vector<8x16xf32>
    %66 = tpu.matmul %63, %64, %cst_38 {dimension_numbers = #tpu.dot_dimension_numbers<[1], [1], [0], [0], [0, 0, 1, 0], [], []>} : vector<8x8xf32>, vector<16x8xf32>, vector<8x16xf32> -> vector<8x16xf32>
    %67 = arith.addf %66, %14 : vector<8x16xf32>
    %cst_39 = arith.constant dense<0xFF800000> : vector<8xf32>
    %68 = vector.multi_reduction <maximumf>, %67, %cst_39 [1] : vector<8x16xf32> to vector<8xf32>
    %69 = vector.shape_cast %68 : vector<8xf32> to vector<8x1xf32>
    %70 = vector.broadcast %69 : vector<8x1xf32> to vector<8x16xf32>
    %71 = arith.subf %67, %70 : vector<8x16xf32>
    %72 = math.exp %71 : vector<8x16xf32>
    %cst_40 = arith.constant dense<0.000000e+00> : vector<8xf32>
    %73 = vector.multi_reduction <add>, %72, %cst_40 [1] : vector<8x16xf32> to vector<8xf32>
    %74 = vector.shape_cast %73 : vector<8xf32> to vector<8x1xf32>
    %cst_41 = arith.constant dense<0.000000e+00> : vector<8x8xf32>
    %75 = tpu.matmul %72, %65, %cst_41 {dimension_numbers = #tpu.dot_dimension_numbers<[1], [0], [0], [1], [0, 0, 1, 1], [], []>} : vector<8x16xf32>, vector<16x8xf32>, vector<8x8xf32> -> vector<8x8xf32>
    %76 = vector.broadcast %74 : vector<8x1xf32> to vector<8x8xf32>
    %77 = arith.divf %75, %76 : vector<8x8xf32>
    %c0_42 = arith.constant 0 : index
    %c24_43 = arith.constant 24 : index
    %78 = vector.load %arg18[%c0_42, %c24_43] : memref<8x32xf32, #tpu.memory_space<vmem>>, vector<8x8xf32>
    tpu.vector_store %arg18[%c0_42, %c24_43], %77 {strides = array<i32>} : memref<8x32xf32, #tpu.memory_space<vmem>>, vector<8x8xf32>,
    %c0_44 = arith.constant 0 : index
    %c0_45 = arith.constant 0 : index
    %79 = vector.load %arg18[%c0_44, %c0_45] : memref<8x32xf32, #tpu.memory_space<vmem>>, vector<8x32xf32>
    %c0_46 = arith.constant 0 : index
    %c0_47 = arith.constant 0 : index
    %80 = vector.load %arg8[%c0_46, %c0_47] : memref<32x32xf32, #tpu.memory_space<vmem>>, vector<32x32xf32>
    %cst_48 = arith.constant dense<0.000000e+00> : vector<8x32xf32>
    %81 = tpu.matmul %79, %80, %cst_48 {dimension_numbers = #tpu.dot_dimension_numbers<[1], [0], [0], [1], [0, 0, 1, 1], [], []>} : vector<8x32xf32>, vector<32x32xf32>, vector<8x32xf32> -> vector<8x32xf32>
    %c0_49 = arith.constant 0 : index
    %c0_50 = arith.constant 0 : index
    %82 = vector.load %arg9[%c0_49, %c0_50] : memref<1x32xf32, #tpu.memory_space<vmem>>, vector<1x32xf32>
    %83 = vector.broadcast %82 : vector<1x32xf32> to vector<8x32xf32>
    %84 = arith.addf %81, %83 : vector<8x32xf32>
    %c0_51 = arith.constant 0 : index
    %c0_52 = arith.constant 0 : index
    %85 = vector.load %arg10[%c0_51, %c0_52] : memref<1x32xf32, #tpu.memory_space<vmem>>, vector<1x32xf32>
    %c0_53 = arith.constant 0 : index
    %c0_54 = arith.constant 0 : index
    %86 = vector.load %arg11[%c0_53, %c0_54] : memref<1x32xf32, #tpu.memory_space<vmem>>, vector<1x32xf32>
    %87 = arith.addf %84, %8 : vector<8x32xf32>
    %cst_55 = arith.constant dense<0.000000e+00> : vector<8xf32>
    %88 = vector.multi_reduction <add>, %87, %cst_55 [1] : vector<8x32xf32> to vector<8xf32>
    %89 = vector.shape_cast %88 : vector<8xf32> to vector<8x1xf32>
    %cst_56 = arith.constant 3.200000e+01 : f32
    %90 = vector.broadcast %cst_56 : f32 to vector<8x1xf32>
    %91 = arith.divf %89, %90 : vector<8x1xf32>
    %92 = vector.broadcast %91 : vector<8x1xf32> to vector<8x32xf32>
    %93 = arith.subf %87, %92 : vector<8x32xf32>
    %94 = arith.mulf %93, %93 : vector<8x32xf32>
    %cst_57 = arith.constant dense<0.000000e+00> : vector<8xf32>
    %95 = vector.multi_reduction <add>, %94, %cst_57 [1] : vector<8x32xf32> to vector<8xf32>
    %96 = vector.shape_cast %95 : vector<8xf32> to vector<8x1xf32>
    %cst_58 = arith.constant 3.200000e+01 : f32
    %97 = vector.broadcast %cst_58 : f32 to vector<8x1xf32>
    %98 = arith.divf %96, %97 : vector<8x1xf32>
    %99 = vector.broadcast %91 : vector<8x1xf32> to vector<8x32xf32>
    %100 = arith.subf %87, %99 : vector<8x32xf32>
    %cst_59 = arith.constant 9.99999974E-6 : f32
    %101 = vector.broadcast %cst_59 : f32 to vector<8x1xf32>
    %102 = arith.addf %98, %101 : vector<8x1xf32>
    %103 = math.rsqrt %102 : vector<8x1xf32>
    %104 = vector.broadcast %103 : vector<8x1xf32> to vector<8x32xf32>
    %105 = arith.mulf %100, %104 : vector<8x32xf32>
    %106 = vector.broadcast %85 : vector<1x32xf32> to vector<8x32xf32>
    %107 = arith.mulf %105, %106 : vector<8x32xf32>
    %108 = vector.broadcast %86 : vector<1x32xf32> to vector<8x32xf32>
    %109 = arith.addf %107, %108 : vector<8x32xf32>
    %c0_60 = arith.constant 0 : index
    %c0_61 = arith.constant 0 : index
    %110 = vector.load %arg12[%c0_60, %c0_61] : memref<32x64xf32, #tpu.memory_space<vmem>>, vector<32x64xf32>
    %cst_62 = arith.constant dense<0.000000e+00> : vector<8x64xf32>
    %111 = tpu.matmul %109, %110, %cst_62 {dimension_numbers = #tpu.dot_dimension_numbers<[1], [0], [0], [1], [0, 0, 1, 1], [], []>} : vector<8x32xf32>, vector<32x64xf32>, vector<8x64xf32> -> vector<8x64xf32>
    %c0_63 = arith.constant 0 : index
    %c0_64 = arith.constant 0 : index
    %112 = vector.load %arg13[%c0_63, %c0_64] : memref<1x64xf32, #tpu.memory_space<vmem>>, vector<1x64xf32>
    %113 = vector.broadcast %112 : vector<1x64xf32> to vector<8x64xf32>
    %114 = arith.addf %111, %113 : vector<8x64xf32>
    %cst_65 = arith.constant 0.000000e+00 : f32
    %115 = vector.broadcast %cst_65 : f32 to vector<8x64xf32>
    %116 = arith.maximumf %114, %115 : vector<8x64xf32>
    %c0_66 = arith.constant 0 : index
    %c0_67 = arith.constant 0 : index
    %117 = vector.load %arg14[%c0_66, %c0_67] : memref<64x32xf32, #tpu.memory_space<vmem>>, vector<64x32xf32>
    %cst_68 = arith.constant dense<0.000000e+00> : vector<8x32xf32>
    %118 = tpu.matmul %116, %117, %cst_68 {dimension_numbers = #tpu.dot_dimension_numbers<[1], [0], [0], [1], [0, 0, 1, 1], [], []>} : vector<8x64xf32>, vector<64x32xf32>, vector<8x32xf32> -> vector<8x32xf32>
    %c0_69 = arith.constant 0 : index
    %c0_70 = arith.constant 0 : index
    %119 = vector.load %arg15[%c0_69, %c0_70] : memref<1x32xf32, #tpu.memory_space<vmem>>, vector<1x32xf32>
    %120 = vector.broadcast %119 : vector<1x32xf32> to vector<8x32xf32>
    %121 = arith.addf %118, %120 : vector<8x32xf32>
    %122 = arith.addf %121, %109 : vector<8x32xf32>
    %cst_71 = arith.constant dense<0.000000e+00> : vector<8xf32>
    %123 = vector.multi_reduction <add>, %122, %cst_71 [1] : vector<8x32xf32> to vector<8xf32>
    %124 = vector.shape_cast %123 : vector<8xf32> to vector<8x1xf32>
    %cst_72 = arith.constant 3.200000e+01 : f32
    %125 = vector.broadcast %cst_72 : f32 to vector<8x1xf32>
    %126 = arith.divf %124, %125 : vector<8x1xf32>
    %127 = vector.broadcast %126 : vector<8x1xf32> to vector<8x32xf32>
    %128 = arith.subf %122, %127 : vector<8x32xf32>
    %129 = arith.mulf %128, %128 : vector<8x32xf32>
    %cst_73 = arith.constant dense<0.000000e+00> : vector<8xf32>
    %130 = vector.multi_reduction <add>, %129, %cst_73 [1] : vector<8x32xf32> to vector<8xf32>
    %131 = vector.shape_cast %130 : vector<8xf32> to vector<8x1xf32>
    %cst_74 = arith.constant 3.200000e+01 : f32
    %132 = vector.broadcast %cst_74 : f32 to vector<8x1xf32>
    %133 = arith.divf %131, %132 : vector<8x1xf32>
    %134 = vector.broadcast %126 : vector<8x1xf32> to vector<8x32xf32>
    %135 = arith.subf %122, %134 : vector<8x32xf32>
    %cst_75 = arith.constant 9.99999974E-6 : f32
    %136 = vector.broadcast %cst_75 : f32 to vector<8x1xf32>
    %137 = arith.addf %133, %136 : vector<8x1xf32>
    %138 = math.rsqrt %137 : vector<8x1xf32>
    %139 = vector.broadcast %138 : vector<8x1xf32> to vector<8x32xf32>
    %140 = arith.mulf %135, %139 : vector<8x32xf32>
    %141 = vector.broadcast %85 : vector<1x32xf32> to vector<8x32xf32>
    %142 = arith.mulf %140, %141 : vector<8x32xf32>
    %143 = vector.broadcast %86 : vector<1x32xf32> to vector<8x32xf32>
    %144 = arith.addf %142, %143 : vector<8x32xf32>
    %c0_76 = arith.constant 0 : index
    %c0_77 = arith.constant 0 : index
    %c0_78 = arith.constant 0 : index
    %145 = vector.load %arg16[%c0_76, %c0_77, %c0_78] : memref<1x8x32xf32, #tpu.memory_space<vmem>>, vector<1x8x32xf32>
    %146 = vector.shape_cast %145 : vector<1x8x32xf32> to vector<8x32xf32>
    %147 = vector.shape_cast %144 : vector<8x32xf32> to vector<1x8x32xf32>
    tpu.vector_store %arg16[%c0_76, %c0_77, %c0_78], %147 {strides = array<i32>} : memref<1x8x32xf32, #tpu.memory_space<vmem>>, vector<1x8x32xf32>,
    return
  }
  func.func @transform_0(%arg0: i32, %arg1: i32) -> (i32, i32, i32) {
    %c0_i32 = arith.constant 0 : i32
    %c0_i32_0 = arith.constant 0 : i32
    %c0_i32_1 = arith.constant 0 : i32
    return %arg0, %c0_i32, %c0_i32_0 : i32, i32, i32
  }
  func.func @transform_1(%arg0: i32, %arg1: i32) -> (i32, i32) {
    %c0_i32 = arith.constant 0 : i32
    %c0_i32_0 = arith.constant 0 : i32
    return %arg1, %c0_i32 : i32, i32
  }
  func.func @transform_2(%arg0: i32, %arg1: i32) -> (i32, i32) {
    %c0_i32 = arith.constant 0 : i32
    %c0_i32_0 = arith.constant 0 : i32
    %c0_i32_1 = arith.constant 0 : i32
    return %c0_i32, %c0_i32_0 : i32, i32
  }
  func.func @transform_3(%arg0: i32, %arg1: i32) -> (i32, i32) {
    %c0_i32 = arith.constant 0 : i32
    %c0_i32_0 = arith.constant 0 : i32
    %c0_i32_1 = arith.constant 0 : i32
    return %c0_i32, %c0_i32_0 : i32, i32
  }
  func.func @transform_4(%arg0: i32, %arg1: i32) -> (i32, i32) {
    %c0_i32 = arith.constant 0 : i32
    %c0_i32_0 = arith.constant 0 : i32
    %c0_i32_1 = arith.constant 0 : i32
    return %c0_i32, %c0_i32_0 : i32, i32
  }
  func.func @transform_5(%arg0: i32, %arg1: i32) -> (i32, i32) {
    %c0_i32 = arith.constant 0 : i32
    %c0_i32_0 = arith.constant 0 : i32
    %c0_i32_1 = arith.constant 0 : i32
    return %c0_i32, %c0_i32_0 : i32, i32
  }
  func.func @transform_6(%arg0: i32, %arg1: i32) -> (i32, i32) {
    %c0_i32 = arith.constant 0 : i32
    %c0_i32_0 = arith.constant 0 : i32
    %c0_i32_1 = arith.constant 0 : i32
    return %c0_i32, %c0_i32_0 : i32, i32
  }
  func.func @transform_7(%arg0: i32, %arg1: i32) -> (i32, i32) {
    %c0_i32 = arith.constant 0 : i32
    %c0_i32_0 = arith.constant 0 : i32
    %c0_i32_1 = arith.constant 0 : i32
    return %c0_i32, %c0_i32_0 : i32, i32
  }
  func.func @transform_8(%arg0: i32, %arg1: i32) -> (i32, i32) {
    %c0_i32 = arith.constant 0 : i32
    %c0_i32_0 = arith.constant 0 : i32
    %c0_i32_1 = arith.constant 0 : i32
    return %c0_i32, %c0_i32_0 : i32, i32
  }
  func.func @transform_9(%arg0: i32, %arg1: i32) -> (i32, i32) {
    %c0_i32 = arith.constant 0 : i32
    %c0_i32_0 = arith.constant 0 : i32
    %c0_i32_1 = arith.constant 0 : i32
    return %c0_i32, %c0_i32_0 : i32, i32
  }
  func.func @transform_10(%arg0: i32, %arg1: i32) -> (i32, i32) {
    %c0_i32 = arith.constant 0 : i32
    %c0_i32_0 = arith.constant 0 : i32
    %c0_i32_1 = arith.constant 0 : i32
    return %c0_i32, %c0_i32_0 : i32, i32
  }
  func.func @transform_11(%arg0: i32, %arg1: i32) -> (i32, i32) {
    %c0_i32 = arith.constant 0 : i32
    %c0_i32_0 = arith.constant 0 : i32
    %c0_i32_1 = arith.constant 0 : i32
    return %c0_i32, %c0_i32_0 : i32, i32
  }
  func.func @transform_12(%arg0: i32, %arg1: i32) -> (i32, i32) {
    %c0_i32 = arith.constant 0 : i32
    %c0_i32_0 = arith.constant 0 : i32
    %c0_i32_1 = arith.constant 0 : i32
    return %c0_i32, %c0_i32_0 : i32, i32
  }
  func.func @transform_13(%arg0: i32, %arg1: i32) -> (i32, i32) {
    %c0_i32 = arith.constant 0 : i32
    %c0_i32_0 = arith.constant 0 : i32
    %c0_i32_1 = arith.constant 0 : i32
    return %c0_i32, %c0_i32_0 : i32, i32
  }
  func.func @transform_14(%arg0: i32, %arg1: i32) -> (i32, i32, i32) {
    %c0_i32 = arith.constant 0 : i32
    %c0_i32_0 = arith.constant 0 : i32
    return %arg0, %arg1, %c0_i32 : i32, i32, i32
  }
}

</mosaic_0001>

<bundles_post_ra>
// kernel: tpu_custom_call.1
= control target key start
LH: loop header
LB: loop body
LE: loop exit
PB: predicated region body
PF: predicated region fallthrough
CT: control target
= control target key end

     0   :  { %s3179_s0 = inlined_call_operand.vmem [shape: f32[2,16,32], index: 0, kind: input, shape index: {}]   ;;  %s3180_s1 = inlined_call_operand.hbm [shape: f32[16,16], index: 1, kind: input, shape index: {}]   ;;  %s3181_s2 = inlined_call_operand.vmem [shape: f32[32,32], index: 2, kind: input, shape index: {}]   ;;  %s3182_s3 = inlined_call_operand.vmem [shape: f32[1,32], index: 3, kind: input, shape index: {}]   ;;  %s3183_s4 = inlined_call_operand.vmem [shape: f32[32,64], index: 4, kind: input, shape index: {}]   ;;  %s3184_s5 = inlined_call_operand.vmem [shape: f32[1,64], index: 5, kind: input, shape index: {}]   ;;  %s3185_s6 = inlined_call_operand.hbm [shape: f32[32,32], index: 6, kind: input, shape index: {}]   ;;  %s3186_s7 = inlined_call_operand.vmem [shape: f32[1,32], index: 7, kind: input, shape index: {}]   ;;  %s3187_s8 = inlined_call_operand.vmem [shape: f32[1,32], index: 8, kind: input, shape index: {}]   ;;  %s3188_s9 = inlined_call_operand.vmem [shape: f32[1,32], index: 9, kind: input, shape index: {}]   ;;  %s3189_s10 = inlined_call_operand.hbm [shape: f32[32,64], index: 10, kind: input, shape index: {}]   ;;  %s3190_s11 = inlined_call_operand.vmem [shape: f32[1,64], index: 11, kind: input, shape index: {}]   ;;  %s3191_s12 = inlined_call_operand.vmem [shape: f32[64,32], index: 12, kind: input, shape index: {}]   ;;  %s3192_s13 = inlined_call_operand.vmem [shape: f32[1,32], index: 13, kind: input, shape index: {}]   ;;  %s3193_s14 = inlined_call_operand.hbm [shape: f32[2,16,32], index: 14, kind: output, shape index: {}]  }
   0x1   :  { %3207 = sst [smem:[#allocation18_spill]] %s3181_s2 }
   0x2   :  { %3208 = sst [smem:[#allocation19_spill]] %s3182_s3 }
   0x3   :  { %3209 = sst [smem:[#allocation20_spill]] %s3184_s5 }
   0x4   :  { %3210 = sst [smem:[#allocation21_spill]] %s3185_s6 }
   0x5   :  { %3211 = sst [smem:[#allocation22_spill]] %s3186_s7 }
   0x6   :  { %3212 = sst [smem:[#allocation23_spill]] %s3187_s8 }
   0x7   :  { %3213 = sst [smem:[#allocation24_spill]] %s3188_s9 }
   0x8   :  { %3214 = sst [smem:[#allocation25_spill]] %s3189_s10 }
   0x9   :  { %3215 = sst [smem:[#allocation26_spill]] %s3190_s11 }
   0xa   :  { %3216 = sst [smem:[#allocation27_spill]] %s3191_s12 }
   0xb   :  { %3217 = sst [smem:[#allocation28_spill]] %s3192_s13 }
   0xc   :  { %3218 = sst [smem:[#allocation29_spill]] %s3193_s14 }
   0xd   :  { %19 = vsyncpa [#allocation5], 0 }
   0xe   :  { %21 = vsyncpa [#allocation5 + $0x1], 0 }
   0xf   :  { %22 = vsyncpa [#allocation8], 0 }
  0x10   :  { %23 = vsyncpa [#allocation6], 0 }
  0x11   :  { %25 = vsyncpa [#allocation6 + $0x1], 0  ;;  %s2688_s29 = smov 0   ;;  %s2690_s30 = smov 0  }
  0x12   :  { %s2692_s15 = smov 0   ;;  %s2694_s16 = smov 0  }
  0x13   :  { %s2696_s17 = smov 0   ;;  %s2698_s18 = smov 0  }
  0x14   :  { %s2700_s19 = smov 0   ;;  %s2702_s20 = smov 0  }
  0x15   :  { %s2704_s21 = smov 0   ;;  %s2706_s22 = smov 0  }
  0x16   :  { %s2708_s23 = smov 0  }
  0x17 LB: > { %3219 = sst [smem:[#allocation14_spill]] %s2552_s29  ;;  %s1896_s24 = sadd.s32 4294967295, %s2592_s23   ;;  %s2592_s23 = sphi %s2708_s23, %s31_s23   ;;  %s2588_s22 = sphi %s2706_s22, %s3265_s22   ;;  %s2584_s21 = sphi %s2704_s21, %s3264_s21   ;;  %s2580_s20 = sphi %s2702_s20, %s3263_s20   ;;  %s2576_s19 = sphi %s2700_s19, %s3262_s19   ;;  %s2572_s18 = sphi %s2698_s18, %s3261_s18   ;;  %s2568_s17 = sphi %s2696_s17, %s3260_s17   ;;  %s2564_s16 = sphi %s2694_s16, %s3259_s16   ;;  %s2560_s15 = sphi %s2692_s15, %s3258_s15   ;;  %s2556_s30 = sphi %s2690_s30, %s3257_s30   ;;  %s2552_s29 = sphi %s2688_s29, %s3256_s29  }
  0x18   : > { %s1897_s25 = sadd.s32 4294967294, %s2592_s23   ;;  %p89_p0 = scmp.ne.s32.totalorder %s2568_s17, %s2564_s16 }
  0x19   : > { %p2744_p1 = scmp.eq.s32.totalorder %s1896_s24, 0  ;;  %p366_p2 = scmp.ne.s32.totalorder %s2560_s15, %s2556_s30 }
  0x1a   : > { %p367_p3 = scmp.eq.s32.totalorder %s1896_s24, 3  ;;  %p372_p5 = scmp.ne.s32.totalorder %s2556_s30, %s2552_s29 }
  0x1b   : > { %s3220_s26 = scalar_select %p2744_p1, 1, 0 }
  0x1c   : > { %p2752_p4 = por %p2744_p1, %p89_p0  ;;  %p2758_p6 = por %p367_p3, %p366_p2 }
  0x1d   : > { %p373_p7 = scmp.eq.s32.totalorder %s1897_s25, 3  ;;  %p1898_p8 = scmp.ge.s32.totalorder %s2592_s23, 1 }
  0x1e   : > { %s3221_s27 = scalar_select %p2752_p4, 1, 0 }
  0x1f   : > { %s3222_s28 = scalar_select %p2758_p6, 1, 0 }
  0x20   : > { %p380_p9 = scmp.lt.s32.totalorder %s2592_s23, 5  ;;  %p2764_p10 = por %p373_p7, %p372_p5 }
  0x21   : > { %3223 = sst [smem:[#allocation15_spill]] %s3222_s28  ;;  %s2594_s24 = smov [#allocation7]  }
  0x22   : > { %s3224_s16 = scalar_select %p2764_p10, 1, 0 }
  0x23   : > { %p2768_p11 = pnand %p1898_p8, %p380_p9  ;;  %s404_s13 = sshll.u32 %s2594_s24, 4  ;;  %s405_s13 = int_to_ptr.vmem [resolvable:$true] %s404_s13 }
  0x24   : > { %3225 = sst [smem:[#allocation16_spill]] %s3224_s16  ;;  %s2595_s25 = smov [#allocation9]  }
  0x25   : > { %s3226_s14 = scalar_select %p2768_p11, 1, 0 }
  0x26   : > { %p2199_p12 = pneg %p2768_p11  ;;  %s426_s28 = sshll.u32 %s2595_s25, 4  ;;  %s2780_s28 = int_to_ptr.vmem [resolvable:$true] %s426_s28 }
  0x27   : > { %s3228_s6 = sld [smem:[#allocation21_spill]] }
  0x28   : > { %p2776_p13 = pnand %p2199_p12, %p2744_p1 }
  0x2a   : > { %p2382_p2 = pneg %p2776_p13 }
  0x2d   : > { %s2380_s9 = scalar_lea.hbm %s3228_s6, 512 }
  0x2e   : > { %p2381_p0 = scmp.ne.s32.totalorder %s3228_s6, %s2380_s9  ;;  %p2387_p7 = scmp.lt.u32.totalorder %s2380_s9, %s3228_s6 }
  0x30   : > { %p2383_p3 = pnand %p2382_p2, %p2381_p0 }
  0x32   : > { %p2384_p5 = pneg %p2383_p3 }
  0x34   : > { %p2389_p8 = pnand %p2387_p7, %p2384_p5 }
  0x36   : > { %2392 = shalt.err (!%p2389_p8)
}
  0x37   : > { %s2393_s25 = scalar_lea.vmem %s405_s13, 512  ;;  %p2401_p6 = scmp.lt.s32.totalorder %s405_s13, %s405_s13 }
  0x38   : > { %p2394_p9 = scmp.ne.s32.totalorder %s405_s13, %s2393_s25  ;;  %p2402_p1 = scmp.lt.s32.totalorder %s2393_s25, %s2393_s25 }
  0x3a   : > { %p2396_p12 = pnand %p2394_p9, %p2382_p2  ;;  %p2403_p4 = por %p2402_p1, %p2401_p6 }
  0x3c   : > { %p2397_p10 = pneg %p2396_p12 }
  0x3e   : > { %p2404_p11 = pnand %p2403_p4, %p2397_p10 }
  0x40   : > { %2407 = shalt.err (!%p2404_p11)
}
  0x41   : > { %s2596_s8 = smov 128   ;;  %s2597_s11 = smov 8  }
  0x42   : > { %2202 = dma.hbm_to_vmem [thread:$0]  (!%p2776_p13), %s3228_s6, 512, %s405_s13, [#allocation8], %s2596_s8, %s2596_s8, %s2597_s11  }
  0x43   : > { %s3229_s10 = sld [smem:[#allocation25_spill]] }
  0x49   : > { %s2408_s24 = scalar_lea.hbm %s3229_s10, 512 }
  0x4a   : > { %p2409_p0 = scmp.ne.s32.totalorder %s3229_s10, %s2408_s24  ;;  %p2415_p6 = scmp.lt.u32.totalorder %s2408_s24, %s3229_s10 }
  0x4c   : > { %p2411_p1 = pnand %p2409_p0, %p2382_p2 }
  0x4e   : > { %p2412_p4 = pneg %p2411_p1 }
  0x50   : > { %p2417_p10 = pnand %p2415_p6, %p2412_p4 }
  0x52   : > { %2420 = shalt.err (!%p2417_p10)
}
  0x53   : > { %s2421_s13 = scalar_lea.vmem %s2780_s28, 512  ;;  %p2429_p7 = scmp.lt.s32.totalorder %s2780_s28, %s2780_s28 }
  0x54   : > { %p2422_p11 = scmp.ne.s32.totalorder %s2780_s28, %s2421_s13  ;;  %p2430_p8 = scmp.lt.s32.totalorder %s2421_s13, %s2421_s13 }
  0x56   : > { %p2424_p3 = pnand %p2422_p11, %p2382_p2  ;;  %p2431_p9 = por %p2430_p8, %p2429_p7 }
  0x58   : > { %p2425_p5 = pneg %p2424_p3 }
  0x5a   : > { %p2432_p12 = pnand %p2431_p9, %p2425_p5 }
  0x5c   : > { %2435 = shalt.err (!%p2432_p12)
}
  0x5d   : > { %2205 = dma.hbm_to_vmem [thread:$0]  (!%p2776_p13), %s3229_s10, 512, %s2780_s28, [#allocation8], %s2596_s8, %s2596_s8, %s2597_s11  }
  0x5e   : > { %s40_s5 = sadd.s32 1, %s2584_s21  ;;  %s43_s29 = sadd.s32 1, %s2588_s22 }
  0x5f   : > { %p41_p2 = scmp.ge.s32.totalorder %s40_s5, 2  ;;  %s76_s7 = sadd.s32 1, %s2572_s18 }
  0x60   : > { %p83_p0 = scmp.ne.s32.totalorder %s2572_s18, %s2568_s17  ;;  %p84_p1 = scmp.eq.s32.totalorder %s2592_s23, 0 }
  0x61   : > { %s3267_s5 = smov (%p41_p2, %s40_s5), 0  ;;  %s3269_s29 = smov (!%p41_p2, %s43_s29), %s2588_s22 }
  0x62   : > { %3230 = sst [smem:[#allocation17_spill]] %s3267_s5  ;;  %s73_s9 = ssub.s32 %s2584_s21, %s3267_s5 }
  0x63   : > { %p45_p4 = scmp.ge.s32.totalorder %s3269_s29, 2  ;;  %p74_p6 = scmp.eq.s32.totalorder %s73_s9, 0 }
  0x64   : > { %p2840_p10 = por %p84_p1, %p83_p0  ;;  %s356_s8 = sadd.s32 1, %s2560_s15 }
  0x65   : > { %s3271_s29 = smov (%p45_p4, %s3269_s29), 0  ;;  %p2216_p13 = scmp.lt.s32.totalorder %s2592_s23, 4 }
  0x66   : > { %s2848_s11 = scalar_select %p74_p6, %s2572_s18, %s76_s7  }
  0x67   : > { %s351_s12 = ssub.s32 %s2588_s22, %s3271_s29  ;;  %s457_s24 = sand.u32 1, %s2572_s18  }
  0x68   : > { %s353_s16 = sor.u32 %s351_s12, %s73_s9  ;;  %s1902_s25 = sshll.u32 %s457_s24, 3 }
  0x69   : > { %p354_p11 = scmp.eq.s32.totalorder %s353_s16, 0  ;;  %s1903_s13 = sshll.u32 %s2584_s21, 7 }
  0x6a   : > { %s2861_s10 = scalar_lea.hbm %s3180_s1, %s1903_s13  ;;  %s461_s7 = scalar_lea.vmem [#allocation4], %s1902_s25 }
  0x6b   : > { %s2856_s2 = scalar_select %p354_p11, %s2560_s15, %s356_s8  }
  0x6c   : > { %s468_s5 = sshll.u32 %s461_s7, 4  ;;  %p2865_p3 = pnand %p2216_p13, %p2840_p10  ;;  %s2869_s5 = int_to_ptr.vmem [resolvable:$true] %s468_s5 }
  0x6d   : > { %s458_s8 = scalar_lea.sflag [#allocation5], %s457_s24  ;;  %s2436_s12 = scalar_lea.hbm %s2861_s10, 128 }
  0x6e   : > { %p2437_p5 = scmp.ne.s32.totalorder %s2861_s10, %s2436_s12  ;;  %p2438_p7 = pneg %p2865_p3 }
  0x6f   : > { %s2441_s28 = scalar_lea.hbm %s3180_s1, 256  ;;  %p2442_p12 = scmp.lt.u32.totalorder %s2861_s10, %s3180_s1 }
  0x70   : > { %p2439_p8 = pnand %p2438_p7, %p2437_p5  ;;  %p2443_p2 = scmp.lt.u32.totalorder %s2441_s28, %s2436_s12 }
  0x71   : > { %p2445_p1 = scmp.lt.u32.totalorder %s2436_s12, %s2861_s10 }
  0x72   : > { %p2440_p9 = pneg %p2439_p8  ;;  %p2444_p0 = por %p2443_p2, %p2442_p12 }
  0x74   : > { %p2446_p4 = por %p2445_p1, %p2444_p0 }
  0x76   : > { %p2447_p6 = pnand %p2446_p4, %p2440_p9 }
  0x78   : > { %2450 = shalt.err (!%p2447_p6)
}
  0x79   : > { %s2451_s24 = scalar_lea.vmem %s2869_s5, 128  ;;  %s2598_s3 = smov [#allocation4]  }
  0x7a   : > { %p2452_p10 = scmp.ne.s32.totalorder %s2869_s5, %s2451_s24  ;;  %s2456_s7 = sshll.u32 %s2598_s3, 4  ;;  %s2457_s7 = int_to_ptr.vmem [resolvable:$false] %s2456_s7 }
  0x7b   : > { %s2458_s6 = scalar_lea.vmem %s2457_s7, 256  ;;  %p2459_p5 = scmp.lt.s32.totalorder %s2869_s5, %s2457_s7 }
  0x7c   : > { %p2454_p13 = pnand %p2452_p10, %p2438_p7  ;;  %p2460_p8 = scmp.lt.s32.totalorder %s2458_s6, %s2451_s24 }
  0x7e   : > { %p2455_p11 = pneg %p2454_p13  ;;  %p2461_p12 = por %p2460_p8, %p2459_p5 }
  0x80   : > { %p2462_p2 = pnand %p2461_p12, %p2455_p11 }
  0x82   : > { %2465 = shalt.err (!%p2462_p2)
}
  0x83   : > { %2209 = dma.hbm_to_vmem [thread:$0]  (!%p2865_p3), %s2861_s10, 128, %s2869_s5, %s458_s8  }
  0x84   : > { %p3233_p9 = scmp.ne.s32.totalorder %s3226_s14, 0 }
  0x85   : > { %s479_s12 = sand.u32 (!%p3233_p9), 1, %s2568_s17   ;;  %p3234_p7 = scmp.ne.s32.totalorder (!%p3233_p9), %s3221_s27, 0 }
  0x86   : > { %477 = sbr.rel (%p3233_p9) target bundleno = 3478 (0xd96), region = 76  ;;  %s2899_s16 = sshll.u32 (!%p3233_p9), %s479_s12, 3 }
  0x87   : > { %s480_s28 = scalar_lea.sflag (!%p3233_p9), [#allocation5], %s479_s12  ;;  %s483_s25 = scalar_lea.vmem (!%p3233_p9), [#allocation4], %s2899_s16 }
  0x8d   : > { %2539 = dma.done.wait (%p3234_p7), %s480_s28, 128  }
  0x8e   : > { %2541 = vsyncadd (%p3234_p7), %s480_s28, 4294967168  ;;  %p3235_p0 = scmp.ne.s32.totalorder %s3220_s26, 0 }
  0x90   : > { %2543 = dma.done.wait (%p3235_p0), [#allocation8], 1024  }
  0x91   : > { %2545 = vsyncadd (%p3235_p0), [#allocation8], 4294966272  ;;  %s538_s10 = sand.u32 1, %s2556_s30   ;;  %p541_p3 = scmp.lt.s32.totalorder %s2580_s20, 1 }
  0x92   : > { %s2914_s14 = sshll.u32 %s538_s10, 3  ;;  %p1911_p1 = scmp.ne.s32.totalorder %s2576_s19, 0 }
  0x93   : > { %s542_s5 = scalar_select %p541_p3, %s2580_s20, 1 }
  0x94   : > { %s540_s24 = scalar_lea.vmem [#allocation10], %s2914_s14  ;;  %549 = sbr.rel (%p1911_p1) target bundleno = 375 (0x177), region = 92  ;;  %v552_v0 = vld [vmem:[%s3183_s4] sm:$0xff] (!%p1911_p1)  ;;  %v553_v1 = vld [vmem:[%s3183_s4 + $0x8] sm:$0xff] (!%p1911_p1)  ;;  %v554_v2 = vld [vmem:[%s3183_s4 + $0x10] sm:$0xff] (!%p1911_p1)  ;;  %vm563_vm0 = vcmask (!%p1911_p1), 261120  }
  0x95   : > { %s1947_s9 = sshll.u32 %s542_s5, 4  ;;  %v2121_v3 = vpack.c.bf16 (!%p1911_p1), %v553_v1, %v552_v0  ;;  %v555_v4 = vld [vmem:[%s3183_s4 + $0x18] sm:$0xff] (!%p1911_p1)  ;;  %s3236_s26 = sld [smem:[#allocation20_spill]] (!%p1911_p1)  ;;  %vm645_vm1 = vcmask (!%p1911_p1), 523264  }
  0x96   : > { %s2920_s13 = scalar_lea.vmem %s3179_s0, %s1947_s9  ;;  %v2125_v6 = vpack.c.bf16 (!%p1911_p1), %v555_v4, %v554_v2 }
  0x97   : > { %v550_v5 = vld [vmem:[%s2920_s13] sm:$0xff] (!%p1911_p1)  ;;  %2122 = vmatprep.subr.bf16.mxu0 (!%p1911_p1), %v2121_v3  ;;  %v551_v7 = vld [vmem:[%s2920_s13 + $0x8] sm:$0xff] (!%p1911_p1) }
  0x98   : > { %2010 = vmatprep.mubr.msk.f32.mxu0 (!%p1911_p1), %vm563_vm0, %v550_v5  ;;  %2124 = vmatpush3.bf16.msra.mxu0 (!%p1911_p1), %v2121_v3 }
  0x99   : > { %2126 = vmatprep.subr.bf16.mxu0 (!%p1911_p1), %v2125_v6 }
  0x9b   : > { %v1912_v8 = vld [vmem:[%s3236_s26] ss:$0 sm:$0xff] }
  0x9c   : > { %2128 = vmatpush3.bf16.msra.mxu0 %v2125_v6 }
  0x9f   : > { %2011 = vmatmul.mubr.msk.f32.vlgmr.msra.gmra.mrb[0].mxu0 %vm563_vm0, %v551_v7 }
 0x172   : > { %v2012_v9 = vpop.f32.mrb[0].mxu0 }
 0x173   : > { %v642_v10 = vadd.f32 %v2012_v9, %v1912_v8  ;;  %v636_v11 = vpop.f32.mrb[1].mxu0 }
 0x174   : > { %v637_v12 = vadd.f32 %v1912_v8, %v636_v11 }
 0x175   : > { %647 = vst.msk [vmem:[#allocation2 + $0x8] sm:$0xff] %vm645_vm1, %v642_v10 }
 0x176   : > { %646 = vst.msk [vmem:[#allocation2] sm:$0xff] %vm645_vm1, %v637_v12 }
 0x177 PF: > { %s3237_s6 = sld [smem:[#allocation18_spill]]  ;;  %v2599_v16 = vmov 0.0|0.0   ;;  %vm2600_vm2 = vmmov 0   ;;  %v2601_v19 = vmov 0.0   ;;  %s1915_s26 = sshll.u32 %s2576_s19, 3  ;;  %vm662_vm3 = vcmask 261120  }
 0x178   : > { %2129 = vmatprep.subr.bf16.mxu1 %v2599_v16  ;;  %2021 = vmatprep.mubr.msk.f32.mxu1 %vm2600_vm2, %v2601_v19  ;;  %s649_s3 = scalar_lea.vmem %s2920_s13, %s1915_s26  ;;  %s2602_s7 = smov 120   ;;  %vm739_vm4 = vcmask 64512   ;;  %v2997_v36 = vld [vmem:[%s483_s25] sm:$0xff]  ;;  %vm819_vm6 = vcmask 130048   ;;  %vm1091_vm7 = vcmask 130112   ;;  %vm1273_vm8 = vcmask 195712  }
 0x179   : > { %2139 = vmatprep.subr.bf16.mxu0 %v2599_v16  ;;  %2035 = vmatprep.mubr.msk.f32.mxu0 %vm2600_vm2, %v2601_v19  ;;  %v2965_v24 = vld [vmem:[%s649_s3] sm:$0xff]  ;;  %vm2974_vm5 = vmpackc.low %vm739_vm4, %vm739_vm4  ;;  %s3240_s28 = sld [smem:[#allocation19_spill]]  ;;  %s2603_s5 = smov 96   ;;  %vm1455_vm9 = vcmask 261312   ;;  %vm1673_vm10 = vcmask 523264  }
 0x17a   : > { %s2604_s9 = smov 112   ;;  %s2605_s16 = smov 88  }
 0x17b   : > { %s2606_s25 = smov 80   ;;  %s2607_s27 = smov 104  }
 0x17c   : > { %v912_v21 = vld [vmem:[#allocation2 + $0x8] sm:$0xff]  ;;  %s2608_s8 = smov 72   ;;  %s2609_s26 = smov 8  }
 0x17d   : > { %v651_v13 = vld [vmem:[%s3237_s6] sm:$0xff]  ;;  %v652_v14 = vld [vmem:[%s3237_s6 + $0x8] sm:$0xff]  ;;  %v653_v15 = vld [vmem:[%s3237_s6 + $0x10] sm:$0xff]  ;;  %s2610_s3 = smov 16   ;;  %s1943_s13 = sshll.u32 %s2580_s20, 1 }
 0x17e   : > { %v2130_v17 = vpack.c.bf16 %v652_v14, %v651_v13  ;;  %v654_v18 = vld [vmem:[%s3237_s6 + $0x18] sm:$0xff]  ;;  %v911_v20 = vld [vmem:[#allocation2] sm:$0xff]  ;;  %s1776_s12 = sadd.s32 %s2576_s19, %s1943_s13  ;;  %s1765_s19 = scalar_lea.sflag [#allocation6], %s538_s10 }
 0x17f   : > { %v2957_v22 = vpack.i.bf16 %v912_v21, %v911_v20  ;;  %v2133_v23 = vpack.c.bf16 %v654_v18, %v653_v15  ;;  %v2136_v25 = vpack.c.bf16 %v912_v21, %v911_v20  ;;  %v1916_v30 = vld [vmem:[%s3240_s28] ss:$0 sm:$0xff]  ;;  %s3241_s28 = sld [smem:[#allocation22_spill]] }
 0x180   : > { %2131 = vmatpush3.bf16.msra.mxu1 %v2130_v17 }
 0x181   : > { %2132 = vmatprep.subr.bf16.mxu1 %v2599_v16  ;;  %2326 = vrot.lane.b32.xlu0 %v2957_v22, %s2602_s7 }
 0x184   : > { %2134 = vmatpush3.bf16.msra.mxu1 %v2133_v23 }
 0x185   : > { %2135 = vmatprep.subr.bf16.mxu1 %v2599_v16 }
 0x187   : > { %2022 = vmatmul.mubr.msk.f32.vlgmr.msra.gmra.mrb[0].mxu1 %vm662_vm3, %v2965_v24 }
 0x188   : > { %2028 = vmatprep.mubr.msk.f32.mxu1 %vm2600_vm2, %v2601_v19 }
 0x18d   : > { %2138 = vmatpush3.bf16.xpose.msk.msra.mxu1 %vm2974_vm5, %v2136_v25 }
 0x18e   : > { %2142 = vmatprep.subr.bf16.mxu1 %v2599_v16 }
 0x1f3   : > { %v2327_v27 = vpop.permute.xlu0 %2326 }
 0x1f4   : > { %v2329_v28 = vunpack.i.h.bf16 %v2327_v27  ;;  %v2328_v29 = vunpack.i.l.bf16 %v2327_v27 }
 0x1f6   : > { %v2143_v32 = vpack.c.bf16 %v2329_v28, %v2328_v29 }
 0x25a   : > { %v732_v31 = vpop.f32.mrb[0].mxu1 }
 0x25b   : > { %v733_v33 = vadd.f32 %v1916_v30, %v732_v31  ;;  %v2023_v34 = vpop.f32.mrb[1].mxu1 }
 0x25d   : > { %913 = vrot.lane.b32.xlu0 %v733_v33, %s2602_s7  ;;  %2029 = vmatmul.mubr.msk.f32.vlgmr.msra.gmra.mrb[2].mxu1 %vm739_vm4, %v733_v33  ;;  %s2611_s7 = smov 24  }
 0x25e   : > { %2145 = vmatpush3.bf16.xpose.msk.msra.mxu1 %vm2974_vm5, %v2143_v32  ;;  %2042 = vmatprep.mubr.msk.f32.mxu1 %vm2600_vm2, %v2601_v19 }
 0x25f   : > { %2153 = vmatprep.subr.bf16.mxu1 %v2599_v16 }
 0x261   : > { %2331 = vrot.lane.b32.xlu0 %v2957_v22, %s2603_s5  ;;  %s1780_s5 = sshll.u32 %s540_s24, 4  ;;  %s3114_s5 = int_to_ptr.vmem [resolvable:$true] %s1780_s5 }
 0x262   : > { %s2466_s20 = scalar_lea.vmem %s3114_s5, 128 }
 0x263   : > { %p2467_p4 = scmp.ne.s32.totalorder %s3114_s5, %s2466_s20 }
 0x265   : > { %2341 = vrot.lane.b32.xlu0 %v2957_v22, %s2604_s9 }
 0x269   : > { %1095 = vrot.lane.b32.xlu0 %v733_v33, %s2604_s9 }
 0x2cf   : > { %v914_v35 = vpop.permute.xlu0 %913 }
 0x2d0   : > { %2043 = vmatmul.mubr.msk.f32.vlgmr.msra.gmra.mrb[4].mxu1 %vm739_vm4, %v914_v35 }
 0x2d1   : > { %2063 = vmatprep.mubr.msk.f32.mxu1 %vm2600_vm2, %v2601_v19 }
 0x2d3   : > { %v2332_v41 = vpop.permute.xlu0 %2331 }
 0x2d4   : > { %v2334_v42 = vunpack.i.h.bf16 %v2332_v41  ;;  %v2333_v43 = vunpack.i.l.bf16 %v2332_v41 }
 0x2d6   : > { %v2140_v44 = vpack.c.bf16 %v2334_v42, %v2333_v43 }
 0x2d7   : > { %v2342_v61 = vpop.permute.xlu0 %2341 }
 0x2d8   : > { %2141 = vmatpush3.bf16.msra.mxu0 %v2140_v44  ;;  %v2344_v0 = vunpack.i.h.bf16 %v2342_v61  ;;  %v2343_v1 = vunpack.i.l.bf16 %v2342_v61 }
 0x2d9   : > { %2146 = vmatprep.subr.bf16.mxu0 %v2599_v16 }
 0x2da   : > { %v2150_v3 = vpack.c.bf16 %v2344_v0, %v2343_v1 }
 0x2db   : > { %v1096_v5 = vpop.permute.xlu0 %1095 }
 0x330   : > { %v815_v37 = vpop.f32.mrb[2].mxu1 }
 0x331   : > { %v816_v38 = vadd.f32 %v815_v37, %v2997_v36  ;;  %v2030_v39 = vpop.f32.mrb[3].mxu1 }
 0x333   : > { %v820_v40 = vsel %vm819_vm6, %v816_v38, -inf }
 0x334   : > { %821 = vmax.xlane.f32.xlu1 %v820_v40 }
 0x3a3   : > { %v993_v45 = vpop.f32.mrb[4].mxu1 }
 0x3a4   : > { %v994_v46 = vadd.f32 %v993_v45, %v2997_v36  ;;  %v2044_v47 = vpop.f32.mrb[5].mxu1 }
 0x3a6   : > { %v997_v48 = vsel %vm819_vm6, %v994_v46, -inf }
 0x3a7   : > { %998 = vmax.xlane.f32.xlu1 %v997_v48 }
 0x3b8   : > { %2336 = vrot.lane.b32.xlu1 %v2957_v22, %s2605_s16  ;;  %s3242_s16 = sld [smem:[#allocation27_spill]] }
 0x3bc   : > { %2346 = vrot.lane.b32.xlu1 %v2957_v22, %s2606_s25 }
 0x3be   : > { %s3243_s25 = smov %s3242_s16 }
 0x3c0   : > { %2351 = vrot.lane.b32.xlu1 %v2957_v22, %s2607_s27 }
 0x3c1   : > { %v822_v49 = vpop.xlane.xlu1 %821 }
 0x3c2   : > { %v823_v50 = vsub.f32 %v816_v38, %v822_v49 }
 0x3c4   : > { %v824_v51 = vmul.f32 1.442695, %v823_v50  ;;  %1277 = vrot.lane.b32.xlu1 %v733_v33, %s2607_s27  ;;  %s3246_s27 = sld [smem:[#allocation26_spill]] }
 0x3c6   : > { %2360 = vpow2.f32 %v824_v51 }
 0x3d0   : > { %v3007_v52 = vpop.eup %2360 }
 0x3d1   : > { %2036 = vmatmul.mubr.msk.f32.vlgmr.msra.gmra.mrb[0].mxu0 %vm819_vm6, %v3007_v52  ;;  %v826_v44 = vsel %vm819_vm6, %v3007_v52, 0.0 }
 0x3d2   : > { %2049 = vmatprep.mubr.msk.f32.mxu0 %vm2600_vm2, %v2601_v19 }
 0x434   : > { %v999_v53 = vpop.xlane.xlu1 %998 }
 0x435   : > { %v1000_v54 = vsub.f32 %v994_v46, %v999_v53 }
 0x437   : > { %v1001_v55 = vmul.f32 1.442695, %v1000_v54 }
 0x438   : > { %v2337_v56 = vpop.permute.xlu1 %2336 }
 0x439   : > { %2362 = vpow2.f32 %v1001_v55  ;;  %v2339_v57 = vunpack.i.h.bf16 %v2337_v56  ;;  %v2338_v58 = vunpack.i.l.bf16 %v2337_v56  ;;  %v1458_v56 = vld [vmem:[#allocation7] sm:$0xff] }
 0x43b   : > { %v2147_v59 = vpack.c.bf16 %v2339_v57, %v2338_v58  ;;  %v1459_v57 = vld [vmem:[#allocation7 + $0x8] sm:$0xff] }
 0x43c   : > { %v2347_v60 = vpop.permute.xlu1 %2346  ;;  %v2164_v58 = vpack.c.bf16 %v1459_v57, %v1458_v56 }
 0x43d   : > { %v2349_v62 = vunpack.i.h.bf16 %v2347_v60  ;;  %v2348_v63 = vunpack.i.l.bf16 %v2347_v60  ;;  %2148 = vmatpush3.bf16.msra.mxu0 %v2147_v59  ;;  %v1460_v59 = vld [vmem:[#allocation7 + $0x10] sm:$0xff]  ;;  %v1461_v60 = vld [vmem:[#allocation7 + $0x18] sm:$0xff] }
 0x43e   : > { %2149 = vmatprep.subr.bf16.mxu0 %v2599_v16  ;;  %v2167_v61 = vpack.c.bf16 %v1461_v60, %v1460_v59 }
 0x43f   : > { %v2154_v2 = vpack.c.bf16 %v2349_v62, %v2348_v63 }
 0x440   : > { %v2352_v27 = vpop.permute.xlu1 %2351 }
 0x441   : > { %2155 = vmatpush3.bf16.msra.mxu1 %v2154_v2  ;;  %v2354_v28 = vunpack.i.h.bf16 %v2352_v27  ;;  %v2353_v29 = vunpack.i.l.bf16 %v2352_v27 }
 0x442   : > { %2156 = vmatprep.subr.bf16.mxu1 %v2599_v16 }
 0x443   : > { %v2363_v4 = vpop.eup %2362  ;;  %v2157_v30 = vpack.c.bf16 %v2354_v28, %v2353_v29  ;;  %v1661_v28 = vld [vmem:[%s3243_s25 + $0x18] sm:$0xff] }
 0x444   : > { %2050 = vmatmul.mubr.msk.f32.vlgmr.msra.gmra.mrb[2].mxu0 %vm819_vm6, %v2363_v4  ;;  %v1003_v14 = vsel %vm819_vm6, %v2363_v4, 0.0  ;;  %v1934_v4 = vld [vmem:[%s3241_s28] ss:$0 sm:$0xff]  ;;  %s1944_s28 = sshll.u32 %s1776_s12, 7 }
 0x445   : > { %2056 = vmatprep.mubr.msk.f32.mxu0 %vm2600_vm2, %v2601_v19 }
 0x446   : > { %2152 = vmatpush3.bf16.xpose.msk.msra.mxu0 %vm2974_vm5, %v2150_v3 }
 0x447   : > { %2160 = vmatprep.subr.bf16.mxu0 %v2599_v16 }
 0x44d   : > { %2057 = vmatmul.mubr.msk.f32.vlgmr.msra.gmra.mrb[4].mxu0 %vm739_vm4, %v1096_v5 }
 0x44e   : > { %2077 = vmatprep.mubr.msk.f32.mxu0 %vm2600_vm2, %v2601_v19 }
 0x4a4   : > { %v3024_v6 = vpop.f32.mrb[0].mxu0 }
 0x4a5   : > { %v2037_v7 = vpop.f32.mrb[1].mxu0 }
 0x517   : > { %v1081_v8 = vpop.f32.mrb[2].mxu0 }
 0x518   : > { %v2051_v9 = vpop.f32.mrb[3].mxu0 }
 0x520   : > { %v1175_v10 = vpop.f32.mrb[4].mxu0 }
 0x521   : > { %v1176_v11 = vadd.f32 %v1175_v10, %v2997_v36  ;;  %v2058_v12 = vpop.f32.mrb[5].mxu0 }
 0x523   : > { %v1179_v13 = vsel %vm819_vm6, %v1176_v11, -inf }
 0x524   : > { %1180 = vmax.xlane.f32.xlu0 %v1179_v13 }
 0x53a   : > { %2356 = vrot.lane.b32.xlu0 %v2957_v22, %s2608_s8  ;;  %v1278_v22 = vpop.permute.xlu1 %1277  ;;  %s3244_s8 = sld [smem:[#allocation23_spill]] }
 0x559   : > { %1004 = vadd.xlane.f32.xlu0 %v1003_v14 }
 0x5b1   : > { %v1181_v15 = vpop.xlane.xlu0 %1180 }
 0x5b2   : > { %v1182_v17 = vsub.f32 %v1176_v11, %v1181_v15  ;;  %v1574_v15 = vld [vmem:[#allocation9 + $0x8] sm:$0xff] }
 0x5b4   : > { %v1183_v18 = vmul.f32 1.442695, %v1182_v17 }
 0x5b5   : > { %v2357_v20 = vpop.permute.xlu0 %2356 }
 0x5b6   : > { %2364 = vpow2.f32 %v1183_v18  ;;  %v2359_v21 = vunpack.i.h.bf16 %v2357_v20  ;;  %v2358_v23 = vunpack.i.l.bf16 %v2357_v20  ;;  %v1575_v18 = vld [vmem:[#allocation9 + $0x10] sm:$0xff]  ;;  %v1576_v20 = vld [vmem:[#allocation9 + $0x18] sm:$0xff] }
 0x5b8   : > { %v2161_v25 = vpack.c.bf16 %v2359_v21, %v2358_v23  ;;  %v2173_v21 = vpack.c.bf16 %v1576_v20, %v1575_v18  ;;  %v1659_v23 = vld [vmem:[%s3243_s25 + $0x8] sm:$0xff] }
 0x5ba   : > { %2162 = vmatpush3.bf16.msra.mxu0 %v2161_v25  ;;  %v1660_v25 = vld [vmem:[%s3243_s25 + $0x10] sm:$0xff] }
 0x5bb   : > { %2163 = vmatprep.subr.bf16.mxu0 %v2599_v16  ;;  %v2179_v29 = vpack.c.bf16 %v1661_v28, %v1660_v25 }
 0x5c0   : > { %v2365_v31 = vpop.eup %2364 }
 0x5c1   : > { %2064 = vmatmul.mubr.msk.f32.vlgmr.msra.gmra.mrb[6].mxu1 %vm819_vm6, %v2365_v31  ;;  %v1185_v38 = vsel %vm819_vm6, %v2365_v31, 0.0  ;;  %v1663_v31 = vld [vmem:[%s3243_s25 + $0x28] sm:$0xff] }
 0x5c2   : > { %2159 = vmatpush3.bf16.xpose.msk.msra.mxu1 %vm2974_vm5, %v2157_v30  ;;  %2070 = vmatprep.mubr.msk.f32.mxu1 %vm2600_vm2, %v2601_v19  ;;  %v1662_v30 = vld [vmem:[%s3243_s25 + $0x20] sm:$0xff] }
 0x5c3   : > { %2169 = vmatprep.subr.bf16.mxu1 %v2599_v16 }
 0x5c9   : > { %2071 = vmatmul.mubr.msk.f32.vlgmr.msra.gmra.mrb[8].mxu1 %vm739_vm4, %v1278_v22  ;;  %v2182_v22 = vpack.c.bf16 %v1663_v31, %v1662_v30 }
 0x5ca   : > { %2099 = vmatprep.mubr.msk.f32.mxu1 %vm2600_vm2, %v2601_v19 }
 0x694   : > { %v1263_v32 = vpop.f32.mrb[6].mxu1 }
 0x695   : > { %v2065_v33 = vpop.f32.mrb[7].mxu1 }
 0x69c   : > { %v1357_v34 = vpop.f32.mrb[8].mxu1 }
 0x69d   : > { %v1358_v35 = vadd.f32 %v1357_v34, %v2997_v36  ;;  %v2072_v37 = vpop.f32.mrb[9].mxu1  ;;  %v1005_v36 = vpop.xlane.xlu0 %1004 }
 0x69e   : > { %v1936_v37 = vld [vmem:[%s3244_s8] ss:$0 sm:$0xff] }
 0x69f   : > { %v1361_v26 = vsel %vm819_vm6, %v1358_v35, -inf }
 0x6a0   : > { %1362 = vmax.xlane.f32.xlu1 %v1361_v26 }
 0x6a4   : > { %1186 = vadd.xlane.f32.xlu1 %v1185_v38 }
 0x72d   : > { %v1363_v39 = vpop.xlane.xlu1 %1362 }
 0x72e   : > { %v1364_v40 = vsub.f32 %v1358_v35, %v1363_v39 }
 0x730   : > { %v1365_v41 = vmul.f32 1.442695, %v1364_v40 }
 0x731   : > { %v1187_v45 = vpop.xlane.xlu1 %1186 }
 0x732   : > { %2366 = vpow2.f32 %v1365_v41  ;;  %v1665_v41 = vld [vmem:[%s3243_s25 + $0x38] sm:$0xff] }
 0x733   : > { %2368 = vrcp.f32 %v1005_v36 }
 0x734   : > { %2370 = vrcp.f32 %v1187_v45 }
 0x73c   : > { %v2367_v42 = vpop.eup %2366 }
 0x73d   : > { %2078 = vmatmul.mubr.msk.f32.vlgmr.msra.gmra.mrb[6].mxu0 %vm819_vm6, %v2367_v42  ;;  %v1367_v43 = vsel %vm819_vm6, %v2367_v42, 0.0  ;;  %v2369_v46 = vpop.eup %2368 }
 0x73e   : > { %1368 = vadd.xlane.f32.xlu1 %v1367_v43  ;;  %2088 = vmatprep.mubr.msk.f32.mxu0 %vm2600_vm2, %v2601_v19  ;;  %v1086_v47 = vmul.f32 %v2369_v46, %v1081_v8  ;;  %v2371_v48 = vpop.eup %2370  ;;  %v1938_v43 = vld [vmem:[%s3246_s27] ss:$0 sm:$0xff]  ;;  %s3249_s27 = sld [smem:[#allocation29_spill]] }
 0x73f   : > { %v1268_v49 = vmul.f32 %v2371_v48, %v1263_v32  ;;  %2165 = vmatpush3.bf16.msra.mxu0 %v2164_v58 }
 0x740   : > { %2166 = vmatprep.subr.bf16.mxu0 %v2599_v16 }
 0x742   : > { %827 = vadd.xlane.f32.xlu1 %v826_v44 }
 0x743   : > { %2168 = vmatpush3.bf16.msra.mxu0 %v2167_v61 }
 0x744   : > { %2175 = vmatprep.subr.bf16.mxu0 %v2599_v16  ;;  %s3112_s8 = scalar_lea.hbm %s3249_s27, %s1944_s28 }
 0x753   : > { %1088 = vrot.lane.b32.xlu1 %v1086_v47, %s2609_s26  ;;  %s2612_s26 = smov [#allocation10]  }
 0x757   : > { %1270 = vrot.lane.b32.xlu1 %v1268_v49, %s2610_s3  ;;  %s3247_s3 = sld [smem:[#allocation28_spill]] }
 0x75d   : > { %v1940_v47 = vld [vmem:[%s3247_s3] ss:$0 sm:$0xff]  ;;  %s2470_s3 = sshll.u32 %s2612_s26, 4  ;;  %s2471_s3 = int_to_ptr.vmem [resolvable:$false] %s2470_s3 }
 0x75e   : > { %s2472_s13 = scalar_lea.vmem %s2471_s3, 256  ;;  %p2473_p11 = scmp.lt.s32.totalorder %s3114_s5, %s2471_s3 }
 0x75f   : > { %p2474_p5 = scmp.lt.s32.totalorder %s2472_s13, %s2466_s20 }
 0x761   : > { %p2475_p8 = por %p2474_p5, %p2473_p11 }
 0x7cb   : > { %v1369_v50 = vpop.xlane.xlu1 %1368 }
 0x7cf   : > { %v828_v51 = vpop.xlane.xlu1 %827 }
 0x7d0   : > { %2372 = vrcp.f32 %v828_v51 }
 0x7d1   : > { %2374 = vrcp.f32 %v1369_v50 }
 0x7d3   : > { %v1089_v53 = vpop.permute.xlu1 %1088 }
 0x7d7   : > { %v1271_v52 = vpop.permute.xlu1 %1270 }
 0x7da   : > { %v2373_v54 = vpop.eup %2372 }
 0x7db   : > { %v909_v55 = vmul.f32 %v2373_v54, %v3024_v6  ;;  %v2375_v62 = vpop.eup %2374 }
 0x7dd   : > { %910 = vst.msk [vmem:[#allocation3] sm:$0xff] %vm739_vm4, %v909_v55 }
 0x7de   : > { %1092 = vst.msk [vmem:[#allocation3] sm:$0xff] %vm1091_vm7, %v1089_v53 }
 0x7df   : > { %1274 = vst.msk [vmem:[#allocation3] sm:$0xff] %vm1273_vm8, %v1271_v52 }
 0x810   : > { %v1445_v63 = vpop.f32.mrb[6].mxu0 }
 0x811   : > { %v1450_v0 = vmul.f32 %v2375_v62, %v1445_v63  ;;  %v2079_v1 = vpop.f32.mrb[7].mxu0 }
 0x813   : > { %1452 = vrot.lane.b32.xlu0 %v1450_v0, %s2611_s7  ;;  %s3245_s7 = sld [smem:[#allocation24_spill]] }
 0x819   : > { %v1937_v38 = vld [vmem:[%s3245_s7] ss:$0 sm:$0xff]  ;;  %s3248_s7 = sld [smem:[#allocation15_spill]] }
 0x81f   : > { %p3250_p6 = scmp.ne.s32.totalorder %s3248_s7, 0 }
 0x821   : > { %p2468_p10 = pnand %p2467_p4, %p3250_p6 }
 0x823   : > { %p2469_p13 = pneg %p2468_p10 }
 0x825   : > { %p2476_p12 = pnand %p2475_p8, %p2469_p13 }
 0x885   : > { %v1453_v2 = vpop.permute.xlu0 %1452 }
 0x886   : > { %1456 = vst.msk [vmem:[#allocation3] sm:$0xff] %vm1455_vm9, %v1453_v2 }
 0x88d   : > { %v1457_v3 = vld [vmem:[#allocation3] sm:$0xff] }
 0x88e   : > { %2089 = vmatmul.mubr.msk.f32.vlgmr.msra.gmra.mrb[8].mxu0 %vm662_vm3, %v1457_v3 }
 0x88f   : > { %2118 = vmatprep.mubr.msk.f32.mxu0 %vm2600_vm2, %v2601_v19  ;;  %v1573_v19 = vld [vmem:[#allocation9] sm:$0xff] }
 0x890   : > { %v2170_v17 = vpack.c.bf16 %v1574_v15, %v1573_v19 }
 0x892   : > { %2171 = vmatpush3.bf16.msra.mxu1 %v2170_v17 }
 0x893   : > { %2172 = vmatprep.subr.bf16.mxu1 %v2599_v16 }
 0x896   : > { %2174 = vmatpush3.bf16.msra.mxu1 %v2173_v21 }
 0x961   : > { %v1538_v5 = vpop.f32.mrb[8].mxu0 }
 0x962   : > { %v1539_v6 = vadd.f32 %v1934_v4, %v1538_v5  ;;  %v2090_v7 = vpop.f32.mrb[9].mxu0 }
 0x964   : > { %v1544_v8 = vadd.f32 %v1539_v6, %v2965_v24  ;;  %v1658_v24 = vld [vmem:[%s3242_s16] sm:$0xff] }
 0x965   : > { %v2176_v27 = vpack.c.bf16 %v1659_v23, %v1658_v24 }
 0x966   : > { %v1545_v9 = vsel %vm662_vm3, %v1544_v8, 0.0 }
 0x967   : > { %1546 = vadd.xlane.f32.xlu1 %v1545_v9  ;;  %2177 = vmatpush3.bf16.msra.mxu0 %v2176_v27 }
 0x968   : > { %2178 = vmatprep.subr.bf16.mxu0 %v2599_v16 }
 0x96b   : > { %2180 = vmatpush3.bf16.msra.mxu0 %v2179_v29 }
 0x96c   : > { %2181 = vmatprep.subr.bf16.mxu0 %v2599_v16 }
 0x96f   : > { %2183 = vmatpush3.bf16.msra.mxu0 %v2182_v22 }
 0x970   : > { %2184 = vmatprep.subr.bf16.mxu0 %v2599_v16  ;;  %v1664_v16 = vld [vmem:[%s3243_s25 + $0x30] sm:$0xff] }
 0x971   : > { %v2185_v42 = vpack.c.bf16 %v1665_v41, %v1664_v16 }
 0x973   : > { %2186 = vmatpush3.bf16.msra.mxu0 %v2185_v42 }
 0x9f4   : > { %v1547_v10 = vpop.xlane.xlu1 %1546 }
 0x9f5   : > { %v1549_v11 = vmul.f32 0.03125, %v1547_v10 }
 0x9f7   : > { %v1550_v12 = vsub.f32 %v1544_v8, %v1549_v11 }
 0x9f9   : > { %v1551_v13 = vmul.f32 %v1550_v12, %v1550_v12 }
 0x9fb   : > { %v1552_v14 = vsel %vm662_vm3, %v1551_v13, 0.0 }
 0x9fc   : > { %1553 = vadd.xlane.f32.xlu0 %v1552_v14 }
 0xa89   : > { %v1554_v32 = vpop.xlane.xlu0 %1553 }
 0xa8a   : > { %v1555_v33 = vmul.f32 0.03125, %v1554_v32 }
 0xa8c   : > { %v1556_v34 = vadd.f32 1e-05, %v1555_v33 }
 0xa8e   : > { %2376 = vrsqrt.f32 %v1556_v34 }
 0xa98   : > { %v2377_v35 = vpop.eup %2376 }
 0xa99   : > { %v1558_v26 = vmul.f32 %v2377_v35, %v1550_v12 }
 0xa9b   : > { %v1565_v39 = vmul.f32 %v1936_v37, %v1558_v26 }
 0xa9d   : > { %v1572_v40 = vadd.f32 %v1937_v38, %v1565_v39 }
 0xa9f   : > { %2100 = vmatmul.mubr.msk.f32.vlgmr.msra.gmra.mrb[10].mxu1 %vm662_vm3, %v1572_v40 }
 0xb72   : > { %v1653_v36 = vpop.f32.mrb[10].mxu1 }
 0xb73   : > { %v1654_v44 = vadd.f32 %v1938_v43, %v1653_v36  ;;  %v2101_v45 = vpop.f32.mrb[11].mxu1 }
 0xb75   : > { %v1657_v46 = vmax.f32 %v1654_v44, 0.0 }
 0xb77   : > { %2119 = vmatmul.mubr.msk.f32.vlgmr.msra.gmra.mrb[10].mxu0 %vm1673_vm10, %v1657_v46 }
 0xc4a   : > { %v1743_v48 = vpop.f32.mrb[10].mxu0 }
 0xc4b   : > { %v1744_v49 = vadd.f32 %v1940_v47, %v1743_v48  ;;  %v2120_v50 = vpop.f32.mrb[11].mxu0 }
 0xc4d   : > { %v1747_v51 = vadd.f32 %v1744_v49, %v1572_v40 }
 0xc4f   : > { %v1748_v53 = vsel %vm662_vm3, %v1747_v51, 0.0 }
 0xc50   : > { %1749 = vadd.xlane.f32.xlu1 %v1748_v53 }
 0xcdd   : > { %v1750_v54 = vpop.xlane.xlu1 %1749 }
 0xcde   : > { %v1751_v55 = vmul.f32 0.03125, %v1750_v54 }
 0xce0   : > { %v1752_v52 = vsub.f32 %v1747_v51, %v1751_v55 }
 0xce2   : > { %v1753_v56 = vmul.f32 %v1752_v52, %v1752_v52 }
 0xce4   : > { %v1754_v57 = vsel %vm662_vm3, %v1753_v56, 0.0 }
 0xce5   : > { %1755 = vadd.xlane.f32.xlu1 %v1754_v57 }
 0xd72   : > { %v1756_v58 = vpop.xlane.xlu1 %1755 }
 0xd73   : > { %v1757_v59 = vmul.f32 0.03125, %v1756_v58 }
 0xd75   : > { %v1758_v60 = vadd.f32 1e-05, %v1757_v59 }
 0xd77   : > { %2378 = vrsqrt.f32 %v1758_v60 }
 0xd81   : > { %v2379_v61 = vpop.eup %2378 }
 0xd82   : > { %v1760_v62 = vmul.f32 %v2379_v61, %v1752_v52 }
 0xd84   : > { %v1761_v63 = vmul.f32 %v1936_v37, %v1760_v62 }
 0xd86   : > { %v1762_v0 = vadd.f32 %v1937_v38, %v1761_v63 }
 0xd88   : > { %1763 = vst.msk [vmem:[%s540_s24] sm:$0xff] %vm662_vm3, %v1762_v0 }
 0xd89   : > { %2479 = shalt.err (!%p2476_p12)
}
 0xd8a   : > { %s2480_s10 = scalar_lea.hbm %s3112_s8, 128  ;;  %s2484_s12 = scalar_lea.hbm %s3249_s27, 512 }
 0xd8b   : > { %p2481_p2 = scmp.ne.s32.totalorder %s3112_s8, %s2480_s10  ;;  %p2485_p0 = scmp.lt.u32.totalorder %s3112_s8, %s3249_s27 }
 0xd8c   : > { %p2486_p3 = scmp.lt.u32.totalorder %s2484_s12, %s2480_s10  ;;  %p2488_p4 = scmp.lt.u32.totalorder %s2480_s10, %s3112_s8 }
 0xd8d   : > { %p2482_p9 = pnand %p2481_p2, %p3250_p6 }
 0xd8e   : > { %p2487_p1 = por %p2486_p3, %p2485_p0 }
 0xd8f   : > { %p2483_p7 = pneg %p2482_p9 }
 0xd90   : > { %p2489_p10 = por %p2488_p4, %p2487_p1 }
 0xd92   : > { %p2490_p13 = pnand %p2489_p10, %p2483_p7 }
 0xd94   : > { %2493 = shalt.err (!%p2490_p13)
}
 0xd95   : > { %2197 = dma.vmem_to_hbm [thread:$0]  (%p3250_p6), %s3114_s5, 128, %s3112_s8, %s1765_s19  }
 0xd96 PF: > { %s3251_s16 = sld [smem:[#allocation14_spill]]  ;;  %s3252_s20 = sld [smem:[#allocation16_spill]] }
 0xd97   : > { %p2219_p11 = scmp.ge.s32.totalorder %s2592_s23, 2 }
 0xd9c   : > { %s1792_s26 = sand.u32 1, %s3251_s16   ;;  %p3253_p5 = scmp.ne.s32.totalorder %s3252_s20, 0 }
 0xd9d   : > { %s1793_s3 = scalar_lea.sflag [#allocation6], %s1792_s26 }
 0xd9e   : > { %p2211_p8 = pnand %p2219_p11, %p3253_p5 }
 0xda0   : > { %2547 = dma.done.wait (!%p2211_p8), %s1793_s3, 128  }
 0xda1   : > { %2549 = vsyncadd (!%p2211_p8), %s1793_s3, 4294967168  ;;  %s31_s23 = sadd.s32 1, %s2592_s23   ;;  %s3254_s7 = sld [smem:[#allocation17_spill]] }
 0xda2   : > { %p28_p12 = scmp.ge.s32.totalorder %s31_s23, 6   ;;  %s3255_s5 = smov %s3271_s29 }
 0xda3   : > { %s3256_s29 = smov %s2556_s30  ;;  %s3257_s30 = smov %s2560_s15 }
 0xda4   : > { %s3258_s15 = smov %s2856_s2  ;;  %s3259_s16 = smov %s2568_s17 }
 0xda5   : > { %s3260_s17 = smov %s2572_s18  ;;  %s3261_s18 = smov %s2848_s11 }
 0xda6   : > { %s3262_s19 = smov %s2584_s21  ;;  %s3263_s20 = smov %s2588_s22 }
 0xda7   : > { %s3264_s21 = smov %s3254_s7  ;;  %s3265_s22 = smov %s3255_s5 }
 0xda8   :  { %30 = sbr.rel (!%p28_p12) target bundleno = 23 (0x17), region = 137 }
 0xdaf   :  { %1798 = vsyncpa [#allocation5], 1 }
 0xdb0   :  { %1800 = vsyncpa [#allocation5 + $0x1], 1 }
 0xdb1   :  { %1801 = vsyncpa [#allocation8], 1 }
 0xdb2   :  { %1802 = vsyncpa [#allocation6], 1 }
 0xdb3   :  { %1804 = vsyncpa [#allocation6 + $0x1], 1 }

</bundles_post_ra>
